<compile_context>
chip_gen: v7x
topology: tpu7x:2x2x1
jax: 0.10.0
libtpu: 0.0.40
codegen_flags: <defaults>
</compile_context>

<pallas_src>
import functools

import jax
import jax.numpy as jnp
import numpy as np
from jax.experimental import pallas as pl
from jax.experimental.pallas import tpu as pltpu


# ----------------------------------------------------------------------------
# Fused whole-network kernel (built per static layer configuration)
# ----------------------------------------------------------------------------
def _build_fused_kernel(conv_cfgs, n_fc):
    n_conv = len(conv_cfgs)

    def kernel(*refs):
        it = iter(refs)
        cols0_ref = next(it)                           # (OH0, OW0, K0) bf16
        conv_w = [next(it) for _ in range(n_conv)]
        conv_b = [next(it) for _ in range(n_conv)]
        fc_w = [next(it) for _ in range(n_fc)]
        fc_b = [next(it) for _ in range(n_fc)]
        out_ref = next(it)

        f32, bf16 = jnp.float32, jnp.bfloat16

        # --- conv layer 0: wrapper-built im2col patches, one matmul per row
        cfg0 = conv_cfgs[0]
        w0 = conv_w[0][...]                            # (K0, OC0) bf16
        b0 = conv_b[0][...]                            # (1, OC0) f32
        rows = []
        for r in range(cfg0["oh"]):
            patches = cols0_ref[r]                     # (OW0, K0) bf16
            pre = jnp.dot(patches, w0, preferred_element_type=f32) + b0
            rows.append(jnp.tanh(pre))                 # (OW0, OC0) f32

        # --- inner conv layers: im2col fused as kh*kw shifted matmuls ------
        for li in range(1, n_conv):
            cfg = conv_cfgs[li]
            kh, kw, s = cfg["kh"], cfg["kw"], cfg["stride"]
            oh, ow, oc = cfg["oh"], cfg["ow"], cfg["oc"]
            taps = conv_w[li]                          # ref (kh*kw, Cin, OC)
            bias = conv_b[li][...]                     # (1, OC) f32
            new_rows = []
            for r in range(oh):
                acc = jnp.zeros((ow, oc), f32)
                for di in range(kh):
                    src = rows[r * s + di]             # (W_in, Cin) f32
                    for dj in range(kw):
                        if s == 1:
                            cols = src[dj:dj + ow, :]
                        else:
                            cols = jnp.concatenate(
                                [src[dj + t * s:dj + t * s + 1, :]
                                 for t in range(ow)], axis=0)
                        acc = acc + jnp.dot(cols.astype(bf16),
                                            taps[di * kw + dj],
                                            preferred_element_type=f32)
                new_rows.append(jnp.tanh(acc + bias))  # (OW, OC) f32
            rows = new_rows

        # --- first FC layer: contract the still-resident conv features -----
        oh_l, ow_l = conv_cfgs[-1]["oh"], conv_cfgs[-1]["ow"]
        taps0 = fc_w[0]                                # ref (OH*OW, C_last, N0)
        acc = fc_b[0][...]                             # (1, N0) f32
        for r in range(oh_l):
            row = rows[r]                              # (OW_L, C_last) f32
            for c in range(ow_l):
                acc = acc + jnp.dot(row[c:c + 1, :].astype(bf16),
                                    taps0[r * ow_l + c],
                                    preferred_element_type=f32)
        cur = acc

        # --- remaining FC layers (tanh on all but the last) -----------------
        for k in range(1, n_fc):
            cur = jnp.tanh(cur)
            cur = jnp.dot(cur.astype(bf16), fc_w[k][...],
                          preferred_element_type=f32) + fc_b[k][...]

        out_ref[0] = cur.astype(out_ref.dtype)

    return kernel


# ----------------------------------------------------------------------------
# Forward pass wrapper (weights kept in PyTorch layouts, repacked here)
# ----------------------------------------------------------------------------
def cnn2d_forward(params, x, strides):
    """params: {"conv": [(w(OC,C,kh,kw), b(OC,))...], "fc": [(w(out,in), b(out,))...]}
       x: (B, C, H, W) float32 (NCHW, like the PyTorch module)."""
    conv_params = params["conv"]
    fc_params = params["fc"]
    assert len(conv_params) >= 1 and len(fc_params) >= 1
    B, C, H, W = x.shape

    # --- static geometry per conv layer -------------------------------------
    conv_cfgs = []
    hw = H
    for (w, _), s in zip(conv_params, strides):
        oc, ci, kh, kw = w.shape
        oh = (hw - kh) // s + 1
        conv_cfgs.append(dict(oc=oc, cin=ci, kh=kh, kw=kw, stride=s, oh=oh, ow=oh))
        hw = oh
    c_last = conv_cfgs[-1]["oc"]
    oh_l = conv_cfgs[-1]["oh"]
    p_last = oh_l * oh_l
    n_out = fc_params[-1][0].shape[0]

    # --- layout plumbing (cheap, outside the kernel) -------------------------
    x_nhwc = jnp.transpose(x, (0, 2, 3, 1))       # single boundary transpose
    cfg0 = conv_cfgs[0]
    kh0, kw0, s0 = cfg0["kh"], cfg0["kw"], cfg0["stride"]
    oh0, ow0, oc0 = cfg0["oh"], cfg0["ow"], cfg0["oc"]
    pieces = []
    for di in range(kh0):
        for dj in range(kw0):
            pieces.append(x_nhwc[:, di:di + s0 * oh0:s0, dj:dj + s0 * ow0:s0, :])
    k0 = kh0 * kw0 * C
    cols0 = jnp.concatenate(pieces, axis=-1)      # (B, OH0, OW0, kh*kw*C)
    cols0 = cols0.reshape(B * oh0, ow0, k0).astype(jnp.bfloat16)

    # conv layer 0 weight as an im2col matrix, rows ordered (di, dj, c)
    w0, b0 = conv_params[0]
    w0_mat = jnp.transpose(w0, (2, 3, 1, 0)).reshape(k0, oc0).astype(jnp.bfloat16)
    conv_w_in = [w0_mat]
    conv_b_in = [b0.reshape(1, -1).astype(jnp.float32)]
    # inner conv layers: per-tap (Cin, OC) matrices
    for li in range(1, len(conv_params)):
        w, b = conv_params[li]
        oc, ci, kh, kw = w.shape
        taps = jnp.transpose(w, (2, 3, 1, 0)).reshape(kh * kw, ci, oc)
        conv_w_in.append(taps.astype(jnp.bfloat16))
        conv_b_in.append(b.reshape(1, -1).astype(jnp.float32))

    # first FC layer: regroup (out, C*H*W) torch weight per spatial position
    fc_w_in, fc_b_in = [], []
    w, b = fc_params[0]
    n0 = w.shape[0]
    taps0 = jnp.transpose(w.reshape(n0, c_last, oh_l, oh_l), (2, 3, 1, 0))
    fc_w_in.append(taps0.reshape(p_last, c_last, n0).astype(jnp.bfloat16))
    fc_b_in.append(b.reshape(1, -1).astype(jnp.float32))
    for (w, b) in fc_params[1:]:
        fc_w_in.append(jnp.transpose(w).astype(jnp.bfloat16))
        fc_b_in.append(b.reshape(1, -1).astype(jnp.float32))

    # --- single fused pallas_call --------------------------------------------
    kernel = _build_fused_kernel(conv_cfgs, len(fc_params))
    inputs = [cols0] + conv_w_in + conv_b_in + fc_w_in + fc_b_in

    def _resident(arr):
        nd = arr.ndim
        return pl.BlockSpec(arr.shape, lambda b, _nd=nd: (0,) * _nd)

    in_specs = [pl.BlockSpec((oh0, ow0, k0), lambda b: (b, 0, 0))]
    in_specs += [_resident(a) for a in conv_w_in + conv_b_in + fc_w_in + fc_b_in]
    out_specs = pl.BlockSpec((1, 1, n_out), lambda b: (b, 0, 0))

    y = pl.pallas_call(
        kernel,
        out_shape=jax.ShapeDtypeStruct((B, 1, n_out), jnp.float32),
        grid=(B,),
        in_specs=in_specs,
        out_specs=out_specs,
        compiler_params=pltpu.CompilerParams(
            dimension_semantics=("parallel",),
            vmem_limit_bytes=32 * 1024 * 1024),
    )(*inputs)
    return y.reshape(B, n_out)


# ----------------------------------------------------------------------------
# Pure-JAX reference (f32, XLA conv) for correctness checking
# ----------------------------------------------------------------------------
def cnn2d_reference(params, x, strides):
    y = x
    for (w, b), s in zip(params["conv"], strides):
        y = jax.lax.conv_general_dilated(
            y, w, window_strides=(s, s), padding="VALID",
            dimension_numbers=("NCHW", "OIHW", "NCHW"),
            precision=jax.lax.Precision.HIGHEST)
        y = jnp.tanh(y + b.reshape(1, -1, 1, 1))
    y = y.reshape(y.shape[0], -1)
    fcs = params["fc"]
    for (w, b) in fcs[:-1]:
        y = jnp.tanh(jnp.matmul(y, w.T, precision=jax.lax.Precision.HIGHEST) + b)
    w, b = fcs[-1]
    return jnp.matmul(y, w.T, precision=jax.lax.Precision.HIGHEST) + b


# ----------------------------------------------------------------------------
# Parameter initialization (PyTorch layouts, U(-1/sqrt(fan_in), 1/sqrt(fan_in)))
# ----------------------------------------------------------------------------
def make_cnn2d_params(key, n_channels, n_inputs, n_hiddens_per_conv_layer,
                      n_hiddens_per_fc_layer, n_outputs,
                      patch_size_per_conv_layer, stride_per_conv_layer):
    params = {"conv": [], "fc": []}
    n_in = n_channels
    input_hw = int(n_inputs ** 0.5)
    for nh, p, s in zip(n_hiddens_per_conv_layer, patch_size_per_conv_layer,
                        stride_per_conv_layer):
        key, kw_key, kb_key = jax.random.split(key, 3)
        bound = 1.0 / float(np.sqrt(n_in * p * p))
        w = jax.random.uniform(kw_key, (nh, n_in, p, p), minval=-bound,
                               maxval=bound, dtype=jnp.float32)
        b = jax.random.uniform(kb_key, (nh,), minval=-bound, maxval=bound,
                               dtype=jnp.float32)
        params["conv"].append((w, b))
        input_hw = (input_hw - p) // s + 1
        assert input_hw > 0
        n_in = nh
    n_in = input_hw * input_hw * n_in
    for nh in list(n_hiddens_per_fc_layer) + [n_outputs]:
        key, kw_key, kb_key = jax.random.split(key, 3)
        bound = 1.0 / float(np.sqrt(n_in))
        w = jax.random.uniform(kw_key, (nh, n_in), minval=-bound, maxval=bound,
                               dtype=jnp.float32)      # torch Linear (out, in)
        b = jax.random.uniform(kb_key, (nh,), minval=-bound, maxval=bound,
                               dtype=jnp.float32)
        params["fc"].append((w, b))
        n_in = nh
    return params


# ----------------------------------------------------------------------------
# Main
# ----------------------------------------------------------------------------
if __name__ == "__main__":
    batch = 2
    n_channels = 4
    hw = 16
    n_inputs = hw * hw
    n_hiddens_per_conv_layer = [8, 16]
    patch_size_per_conv_layer = [3, 3]
    stride_per_conv_layer = [2, 1]
    n_hiddens_per_fc_layer = [32]
    n_outputs = 10

    key = jax.random.PRNGKey(0)
    pkey, xkey = jax.random.split(key)

    params = make_cnn2d_params(
        pkey, n_channels, n_inputs, n_hiddens_per_conv_layer,
        n_hiddens_per_fc_layer, n_outputs,
        patch_size_per_conv_layer, stride_per_conv_layer)

    x = jax.random.normal(xkey, (batch, n_channels, hw, hw), dtype=jnp.float32)

    fwd = jax.jit(functools.partial(cnn2d_forward,
                                    strides=tuple(stride_per_conv_layer)))
    out = jax.block_until_ready(fwd(params, x))
    assert out.shape == (batch, n_outputs), out.shape

    ref = jax.block_until_ready(
        cnn2d_reference(params, x, tuple(stride_per_conv_layer)))
    max_err = float(jnp.max(jnp.abs(out - ref)))
    assert max_err < 7e-2, f"mismatch vs f32 reference: max abs err {max_err}"

    print("KERNEL_OK")
</pallas_src>

<mosaic_0001>
module attributes {stable_mosaic.version = 11 : i64} {
  func.func @kernel(%arg0: i32, %arg1: memref<7x7x36xbf16, #tpu.memory_space<vmem>>, %arg2: memref<36x8xbf16, #tpu.memory_space<vmem>>, %arg3: memref<9x8x16xbf16, #tpu.memory_space<vmem>>, %arg4: memref<1x8xf32, #tpu.memory_space<vmem>>, %arg5: memref<1x16xf32, #tpu.memory_space<vmem>>, %arg6: memref<25x16x32xbf16, #tpu.memory_space<vmem>>, %arg7: memref<32x10xbf16, #tpu.memory_space<vmem>>, %arg8: memref<1x32xf32, #tpu.memory_space<vmem>>, %arg9: memref<1x10xf32, #tpu.memory_space<vmem>>, %arg10: memref<1x1x10xf32, #tpu.memory_space<vmem>>) attributes {dimension_semantics = [#tpu.dimension_semantics<parallel>], iteration_bounds = array<i64: 2>, scalar_prefetch = 0 : i64, scratch_operands = 0 : i64, tpu.core_type = #tpu.core_type<tc>, window_params = [{transform_indices = @transform_0, window_bounds = array<i64: 7, 7, 36>}, {pipeline_mode = #tpu.pipeline_mode<synchronous>, transform_indices = @transform_1, window_bounds = array<i64: 36, 8>}, {pipeline_mode = #tpu.pipeline_mode<synchronous>, transform_indices = @transform_2, window_bounds = array<i64: 9, 8, 16>}, {pipeline_mode = #tpu.pipeline_mode<synchronous>, transform_indices = @transform_3, window_bounds = array<i64: 1, 8>}, {pipeline_mode = #tpu.pipeline_mode<synchronous>, transform_indices = @transform_4, window_bounds = array<i64: 1, 16>}, {pipeline_mode = #tpu.pipeline_mode<synchronous>, transform_indices = @transform_5, window_bounds = array<i64: 25, 16, 32>}, {pipeline_mode = #tpu.pipeline_mode<synchronous>, transform_indices = @transform_6, window_bounds = array<i64: 32, 10>}, {pipeline_mode = #tpu.pipeline_mode<synchronous>, transform_indices = @transform_7, window_bounds = array<i64: 1, 32>}, {pipeline_mode = #tpu.pipeline_mode<synchronous>, transform_indices = @transform_8, window_bounds = array<i64: 1, 10>}, {transform_indices = @transform_9, window_bounds = array<i64: 1, 1, 10>}]} {
    %c0 = arith.constant 0 : index
    %c0_0 = arith.constant 0 : index
    %0 = vector.load %arg2[%c0, %c0_0] : memref<36x8xbf16, #tpu.memory_space<vmem>>, vector<36x8xbf16>
    %c0_1 = arith.constant 0 : index
    %c0_2 = arith.constant 0 : index
    %1 = vector.load %arg4[%c0_1, %c0_2] : memref<1x8xf32, #tpu.memory_space<vmem>>, vector<1x8xf32>
    %c0_3 = arith.constant 0 : index
    %c0_4 = arith.constant 0 : index
    %c0_5 = arith.constant 0 : index
    %2 = vector.load %arg1[%c0_3, %c0_4, %c0_5] : memref<7x7x36xbf16, #tpu.memory_space<vmem>>, vector<1x7x36xbf16>
    %3 = vector.shape_cast %2 : vector<1x7x36xbf16> to vector<7x36xbf16>
    %cst = arith.constant dense<0.000000e+00> : vector<7x8xf32>
    %4 = tpu.matmul %3, %0, %cst {dimension_numbers = #tpu.dot_dimension_numbers<[1], [0], [0], [1], [0, 0, 1, 1], [], []>} : vector<7x36xbf16>, vector<36x8xbf16>, vector<7x8xf32> -> vector<7x8xf32>
    %5 = vector.broadcast %1 : vector<1x8xf32> to vector<7x8xf32>
    %6 = arith.addf %4, %5 : vector<7x8xf32>
    %7 = math.tanh %6 : vector<7x8xf32>
    %c1 = arith.constant 1 : index
    %c0_6 = arith.constant 0 : index
    %c0_7 = arith.constant 0 : index
    %8 = vector.load %arg1[%c1, %c0_6, %c0_7] : memref<7x7x36xbf16, #tpu.memory_space<vmem>>, vector<1x7x36xbf16>
    %9 = vector.shape_cast %8 : vector<1x7x36xbf16> to vector<7x36xbf16>
    %cst_8 = arith.constant dense<0.000000e+00> : vector<7x8xf32>
    %10 = tpu.matmul %9, %0, %cst_8 {dimension_numbers = #tpu.dot_dimension_numbers<[1], [0], [0], [1], [0, 0, 1, 1], [], []>} : vector<7x36xbf16>, vector<36x8xbf16>, vector<7x8xf32> -> vector<7x8xf32>
    %11 = vector.broadcast %1 : vector<1x8xf32> to vector<7x8xf32>
    %12 = arith.addf %10, %11 : vector<7x8xf32>
    %13 = math.tanh %12 : vector<7x8xf32>
    %c2 = arith.constant 2 : index
    %c0_9 = arith.constant 0 : index
    %c0_10 = arith.constant 0 : index
    %14 = vector.load %arg1[%c2, %c0_9, %c0_10] : memref<7x7x36xbf16, #tpu.memory_space<vmem>>, vector<1x7x36xbf16>
    %15 = vector.shape_cast %14 : vector<1x7x36xbf16> to vector<7x36xbf16>
    %cst_11 = arith.constant dense<0.000000e+00> : vector<7x8xf32>
    %16 = tpu.matmul %15, %0, %cst_11 {dimension_numbers = #tpu.dot_dimension_numbers<[1], [0], [0], [1], [0, 0, 1, 1], [], []>} : vector<7x36xbf16>, vector<36x8xbf16>, vector<7x8xf32> -> vector<7x8xf32>
    %17 = vector.broadcast %1 : vector<1x8xf32> to vector<7x8xf32>
    %18 = arith.addf %16, %17 : vector<7x8xf32>
    %19 = math.tanh %18 : vector<7x8xf32>
    %c3 = arith.constant 3 : index
    %c0_12 = arith.constant 0 : index
    %c0_13 = arith.constant 0 : index
    %20 = vector.load %arg1[%c3, %c0_12, %c0_13] : memref<7x7x36xbf16, #tpu.memory_space<vmem>>, vector<1x7x36xbf16>
    %21 = vector.shape_cast %20 : vector<1x7x36xbf16> to vector<7x36xbf16>
    %cst_14 = arith.constant dense<0.000000e+00> : vector<7x8xf32>
    %22 = tpu.matmul %21, %0, %cst_14 {dimension_numbers = #tpu.dot_dimension_numbers<[1], [0], [0], [1], [0, 0, 1, 1], [], []>} : vector<7x36xbf16>, vector<36x8xbf16>, vector<7x8xf32> -> vector<7x8xf32>
    %23 = vector.broadcast %1 : vector<1x8xf32> to vector<7x8xf32>
    %24 = arith.addf %22, %23 : vector<7x8xf32>
    %25 = math.tanh %24 : vector<7x8xf32>
    %c4 = arith.constant 4 : index
    %c0_15 = arith.constant 0 : index
    %c0_16 = arith.constant 0 : index
    %26 = vector.load %arg1[%c4, %c0_15, %c0_16] : memref<7x7x36xbf16, #tpu.memory_space<vmem>>, vector<1x7x36xbf16>
    %27 = vector.shape_cast %26 : vector<1x7x36xbf16> to vector<7x36xbf16>
    %cst_17 = arith.constant dense<0.000000e+00> : vector<7x8xf32>
    %28 = tpu.matmul %27, %0, %cst_17 {dimension_numbers = #tpu.dot_dimension_numbers<[1], [0], [0], [1], [0, 0, 1, 1], [], []>} : vector<7x36xbf16>, vector<36x8xbf16>, vector<7x8xf32> -> vector<7x8xf32>
    %29 = vector.broadcast %1 : vector<1x8xf32> to vector<7x8xf32>
    %30 = arith.addf %28, %29 : vector<7x8xf32>
    %31 = math.tanh %30 : vector<7x8xf32>
    %c5 = arith.constant 5 : index
    %c0_18 = arith.constant 0 : index
    %c0_19 = arith.constant 0 : index
    %32 = vector.load %arg1[%c5, %c0_18, %c0_19] : memref<7x7x36xbf16, #tpu.memory_space<vmem>>, vector<1x7x36xbf16>
    %33 = vector.shape_cast %32 : vector<1x7x36xbf16> to vector<7x36xbf16>
    %cst_20 = arith.constant dense<0.000000e+00> : vector<7x8xf32>
    %34 = tpu.matmul %33, %0, %cst_20 {dimension_numbers = #tpu.dot_dimension_numbers<[1], [0], [0], [1], [0, 0, 1, 1], [], []>} : vector<7x36xbf16>, vector<36x8xbf16>, vector<7x8xf32> -> vector<7x8xf32>
    %35 = vector.broadcast %1 : vector<1x8xf32> to vector<7x8xf32>
    %36 = arith.addf %34, %35 : vector<7x8xf32>
    %37 = math.tanh %36 : vector<7x8xf32>
    %c6 = arith.constant 6 : index
    %c0_21 = arith.constant 0 : index
    %c0_22 = arith.constant 0 : index
    %38 = vector.load %arg1[%c6, %c0_21, %c0_22] : memref<7x7x36xbf16, #tpu.memory_space<vmem>>, vector<1x7x36xbf16>
    %39 = vector.shape_cast %38 : vector<1x7x36xbf16> to vector<7x36xbf16>
    %cst_23 = arith.constant dense<0.000000e+00> : vector<7x8xf32>
    %40 = tpu.matmul %39, %0, %cst_23 {dimension_numbers = #tpu.dot_dimension_numbers<[1], [0], [0], [1], [0, 0, 1, 1], [], []>} : vector<7x36xbf16>, vector<36x8xbf16>, vector<7x8xf32> -> vector<7x8xf32>
    %41 = vector.broadcast %1 : vector<1x8xf32> to vector<7x8xf32>
    %42 = arith.addf %40, %41 : vector<7x8xf32>
    %43 = math.tanh %42 : vector<7x8xf32>
    %c0_24 = arith.constant 0 : index
    %c0_25 = arith.constant 0 : index
    %44 = vector.load %arg5[%c0_24, %c0_25] : memref<1x16xf32, #tpu.memory_space<vmem>>, vector<1x16xf32>
    %cst_26 = arith.constant 0.000000e+00 : f32
    %45 = vector.broadcast %cst_26 : f32 to vector<5x16xf32>
    %46 = vector.extract_strided_slice %7 {offsets = [0, 0], sizes = [5, 8], strides = [1, 1]} : vector<7x8xf32> to vector<5x8xf32>
    %47 = arith.truncf %46 : vector<5x8xf32> to vector<5x8xbf16>
    %c0_27 = arith.constant 0 : index
    %c0_28 = arith.constant 0 : index
    %c0_29 = arith.constant 0 : index
    %48 = vector.load %arg3[%c0_27, %c0_28, %c0_29] : memref<9x8x16xbf16, #tpu.memory_space<vmem>>, vector<1x8x16xbf16>
    %49 = vector.shape_cast %48 : vector<1x8x16xbf16> to vector<8x16xbf16>
    %cst_30 = arith.constant dense<0.000000e+00> : vector<5x16xf32>
    %50 = tpu.matmul %47, %49, %cst_30 {dimension_numbers = #tpu.dot_dimension_numbers<[1], [0], [0], [1], [0, 0, 1, 1], [], []>} : vector<5x8xbf16>, vector<8x16xbf16>, vector<5x16xf32> -> vector<5x16xf32>
    %51 = arith.addf %45, %50 : vector<5x16xf32>
    %52 = vector.extract_strided_slice %7 {offsets = [1, 0], sizes = [5, 8], strides = [1, 1]} : vector<7x8xf32> to vector<5x8xf32>
    %53 = arith.truncf %52 : vector<5x8xf32> to vector<5x8xbf16>
    %c1_31 = arith.constant 1 : index
    %c0_32 = arith.constant 0 : index
    %c0_33 = arith.constant 0 : index
    %54 = vector.load %arg3[%c1_31, %c0_32, %c0_33] : memref<9x8x16xbf16, #tpu.memory_space<vmem>>, vector<1x8x16xbf16>
    %55 = vector.shape_cast %54 : vector<1x8x16xbf16> to vector<8x16xbf16>
    %cst_34 = arith.constant dense<0.000000e+00> : vector<5x16xf32>
    %56 = tpu.matmul %53, %55, %cst_34 {dimension_numbers = #tpu.dot_dimension_numbers<[1], [0], [0], [1], [0, 0, 1, 1], [], []>} : vector<5x8xbf16>, vector<8x16xbf16>, vector<5x16xf32> -> vector<5x16xf32>
    %57 = arith.addf %51, %56 : vector<5x16xf32>
    %58 = vector.extract_strided_slice %7 {offsets = [2, 0], sizes = [5, 8], strides = [1, 1]} : vector<7x8xf32> to vector<5x8xf32>
    %59 = arith.truncf %58 : vector<5x8xf32> to vector<5x8xbf16>
    %c2_35 = arith.constant 2 : index
    %c0_36 = arith.constant 0 : index
    %c0_37 = arith.constant 0 : index
    %60 = vector.load %arg3[%c2_35, %c0_36, %c0_37] : memref<9x8x16xbf16, #tpu.memory_space<vmem>>, vector<1x8x16xbf16>
    %61 = vector.shape_cast %60 : vector<1x8x16xbf16> to vector<8x16xbf16>
    %cst_38 = arith.constant dense<0.000000e+00> : vector<5x16xf32>
    %62 = tpu.matmul %59, %61, %cst_38 {dimension_numbers = #tpu.dot_dimension_numbers<[1], [0], [0], [1], [0, 0, 1, 1], [], []>} : vector<5x8xbf16>, vector<8x16xbf16>, vector<5x16xf32> -> vector<5x16xf32>
    %63 = arith.addf %57, %62 : vector<5x16xf32>
    %64 = vector.extract_strided_slice %13 {offsets = [0, 0], sizes = [5, 8], strides = [1, 1]} : vector<7x8xf32> to vector<5x8xf32>
    %65 = arith.truncf %64 : vector<5x8xf32> to vector<5x8xbf16>
    %c3_39 = arith.constant 3 : index
    %c0_40 = arith.constant 0 : index
    %c0_41 = arith.constant 0 : index
    %66 = vector.load %arg3[%c3_39, %c0_40, %c0_41] : memref<9x8x16xbf16, #tpu.memory_space<vmem>>, vector<1x8x16xbf16>
    %67 = vector.shape_cast %66 : vector<1x8x16xbf16> to vector<8x16xbf16>
    %cst_42 = arith.constant dense<0.000000e+00> : vector<5x16xf32>
    %68 = tpu.matmul %65, %67, %cst_42 {dimension_numbers = #tpu.dot_dimension_numbers<[1], [0], [0], [1], [0, 0, 1, 1], [], []>} : vector<5x8xbf16>, vector<8x16xbf16>, vector<5x16xf32> -> vector<5x16xf32>
    %69 = arith.addf %63, %68 : vector<5x16xf32>
    %70 = vector.extract_strided_slice %13 {offsets = [1, 0], sizes = [5, 8], strides = [1, 1]} : vector<7x8xf32> to vector<5x8xf32>
    %71 = arith.truncf %70 : vector<5x8xf32> to vector<5x8xbf16>
    %c4_43 = arith.constant 4 : index
    %c0_44 = arith.constant 0 : index
    %c0_45 = arith.constant 0 : index
    %72 = vector.load %arg3[%c4_43, %c0_44, %c0_45] : memref<9x8x16xbf16, #tpu.memory_space<vmem>>, vector<1x8x16xbf16>
    %73 = vector.shape_cast %72 : vector<1x8x16xbf16> to vector<8x16xbf16>
    %cst_46 = arith.constant dense<0.000000e+00> : vector<5x16xf32>
    %74 = tpu.matmul %71, %73, %cst_46 {dimension_numbers = #tpu.dot_dimension_numbers<[1], [0], [0], [1], [0, 0, 1, 1], [], []>} : vector<5x8xbf16>, vector<8x16xbf16>, vector<5x16xf32> -> vector<5x16xf32>
    %75 = arith.addf %69, %74 : vector<5x16xf32>
    %76 = vector.extract_strided_slice %13 {offsets = [2, 0], sizes = [5, 8], strides = [1, 1]} : vector<7x8xf32> to vector<5x8xf32>
    %77 = arith.truncf %76 : vector<5x8xf32> to vector<5x8xbf16>
    %c5_47 = arith.constant 5 : index
    %c0_48 = arith.constant 0 : index
    %c0_49 = arith.constant 0 : index
    %78 = vector.load %arg3[%c5_47, %c0_48, %c0_49] : memref<9x8x16xbf16, #tpu.memory_space<vmem>>, vector<1x8x16xbf16>
    %79 = vector.shape_cast %78 : vector<1x8x16xbf16> to vector<8x16xbf16>
    %cst_50 = arith.constant dense<0.000000e+00> : vector<5x16xf32>
    %80 = tpu.matmul %77, %79, %cst_50 {dimension_numbers = #tpu.dot_dimension_numbers<[1], [0], [0], [1], [0, 0, 1, 1], [], []>} : vector<5x8xbf16>, vector<8x16xbf16>, vector<5x16xf32> -> vector<5x16xf32>
    %81 = arith.addf %75, %80 : vector<5x16xf32>
    %82 = vector.extract_strided_slice %19 {offsets = [0, 0], sizes = [5, 8], strides = [1, 1]} : vector<7x8xf32> to vector<5x8xf32>
    %83 = arith.truncf %82 : vector<5x8xf32> to vector<5x8xbf16>
    %c6_51 = arith.constant 6 : index
    %c0_52 = arith.constant 0 : index
    %c0_53 = arith.constant 0 : index
    %84 = vector.load %arg3[%c6_51, %c0_52, %c0_53] : memref<9x8x16xbf16, #tpu.memory_space<vmem>>, vector<1x8x16xbf16>
    %85 = vector.shape_cast %84 : vector<1x8x16xbf16> to vector<8x16xbf16>
    %cst_54 = arith.constant dense<0.000000e+00> : vector<5x16xf32>
    %86 = tpu.matmul %83, %85, %cst_54 {dimension_numbers = #tpu.dot_dimension_numbers<[1], [0], [0], [1], [0, 0, 1, 1], [], []>} : vector<5x8xbf16>, vector<8x16xbf16>, vector<5x16xf32> -> vector<5x16xf32>
    %87 = arith.addf %81, %86 : vector<5x16xf32>
    %88 = vector.extract_strided_slice %19 {offsets = [1, 0], sizes = [5, 8], strides = [1, 1]} : vector<7x8xf32> to vector<5x8xf32>
    %89 = arith.truncf %88 : vector<5x8xf32> to vector<5x8xbf16>
    %c7 = arith.constant 7 : index
    %c0_55 = arith.constant 0 : index
    %c0_56 = arith.constant 0 : index
    %90 = vector.load %arg3[%c7, %c0_55, %c0_56] : memref<9x8x16xbf16, #tpu.memory_space<vmem>>, vector<1x8x16xbf16>
    %91 = vector.shape_cast %90 : vector<1x8x16xbf16> to vector<8x16xbf16>
    %cst_57 = arith.constant dense<0.000000e+00> : vector<5x16xf32>
    %92 = tpu.matmul %89, %91, %cst_57 {dimension_numbers = #tpu.dot_dimension_numbers<[1], [0], [0], [1], [0, 0, 1, 1], [], []>} : vector<5x8xbf16>, vector<8x16xbf16>, vector<5x16xf32> -> vector<5x16xf32>
    %93 = arith.addf %87, %92 : vector<5x16xf32>
    %94 = vector.extract_strided_slice %19 {offsets = [2, 0], sizes = [5, 8], strides = [1, 1]} : vector<7x8xf32> to vector<5x8xf32>
    %95 = arith.truncf %94 : vector<5x8xf32> to vector<5x8xbf16>
    %c8 = arith.constant 8 : index
    %c0_58 = arith.constant 0 : index
    %c0_59 = arith.constant 0 : index
    %96 = vector.load %arg3[%c8, %c0_58, %c0_59] : memref<9x8x16xbf16, #tpu.memory_space<vmem>>, vector<1x8x16xbf16>
    %97 = vector.shape_cast %96 : vector<1x8x16xbf16> to vector<8x16xbf16>
    %cst_60 = arith.constant dense<0.000000e+00> : vector<5x16xf32>
    %98 = tpu.matmul %95, %97, %cst_60 {dimension_numbers = #tpu.dot_dimension_numbers<[1], [0], [0], [1], [0, 0, 1, 1], [], []>} : vector<5x8xbf16>, vector<8x16xbf16>, vector<5x16xf32> -> vector<5x16xf32>
    %99 = arith.addf %93, %98 : vector<5x16xf32>
    %100 = vector.broadcast %44 : vector<1x16xf32> to vector<5x16xf32>
    %101 = arith.addf %99, %100 : vector<5x16xf32>
    %102 = math.tanh %101 : vector<5x16xf32>
    %cst_61 = arith.constant 0.000000e+00 : f32
    %103 = vector.broadcast %cst_61 : f32 to vector<5x16xf32>
    %104 = vector.extract_strided_slice %13 {offsets = [0, 0], sizes = [5, 8], strides = [1, 1]} : vector<7x8xf32> to vector<5x8xf32>
    %105 = arith.truncf %104 : vector<5x8xf32> to vector<5x8xbf16>
    %c0_62 = arith.constant 0 : index
    %c0_63 = arith.constant 0 : index
    %c0_64 = arith.constant 0 : index
    %106 = vector.load %arg3[%c0_62, %c0_63, %c0_64] : memref<9x8x16xbf16, #tpu.memory_space<vmem>>, vector<1x8x16xbf16>
    %107 = vector.shape_cast %106 : vector<1x8x16xbf16> to vector<8x16xbf16>
    %cst_65 = arith.constant dense<0.000000e+00> : vector<5x16xf32>
    %108 = tpu.matmul %105, %107, %cst_65 {dimension_numbers = #tpu.dot_dimension_numbers<[1], [0], [0], [1], [0, 0, 1, 1], [], []>} : vector<5x8xbf16>, vector<8x16xbf16>, vector<5x16xf32> -> vector<5x16xf32>
    %109 = arith.addf %103, %108 : vector<5x16xf32>
    %110 = vector.extract_strided_slice %13 {offsets = [1, 0], sizes = [5, 8], strides = [1, 1]} : vector<7x8xf32> to vector<5x8xf32>
    %111 = arith.truncf %110 : vector<5x8xf32> to vector<5x8xbf16>
    %c1_66 = arith.constant 1 : index
    %c0_67 = arith.constant 0 : index
    %c0_68 = arith.constant 0 : index
    %112 = vector.load %arg3[%c1_66, %c0_67, %c0_68] : memref<9x8x16xbf16, #tpu.memory_space<vmem>>, vector<1x8x16xbf16>
    %113 = vector.shape_cast %112 : vector<1x8x16xbf16> to vector<8x16xbf16>
    %cst_69 = arith.constant dense<0.000000e+00> : vector<5x16xf32>
    %114 = tpu.matmul %111, %113, %cst_69 {dimension_numbers = #tpu.dot_dimension_numbers<[1], [0], [0], [1], [0, 0, 1, 1], [], []>} : vector<5x8xbf16>, vector<8x16xbf16>, vector<5x16xf32> -> vector<5x16xf32>
    %115 = arith.addf %109, %114 : vector<5x16xf32>
    %116 = vector.extract_strided_slice %13 {offsets = [2, 0], sizes = [5, 8], strides = [1, 1]} : vector<7x8xf32> to vector<5x8xf32>
    %117 = arith.truncf %116 : vector<5x8xf32> to vector<5x8xbf16>
    %c2_70 = arith.constant 2 : index
    %c0_71 = arith.constant 0 : index
    %c0_72 = arith.constant 0 : index
    %118 = vector.load %arg3[%c2_70, %c0_71, %c0_72] : memref<9x8x16xbf16, #tpu.memory_space<vmem>>, vector<1x8x16xbf16>
    %119 = vector.shape_cast %118 : vector<1x8x16xbf16> to vector<8x16xbf16>
    %cst_73 = arith.constant dense<0.000000e+00> : vector<5x16xf32>
    %120 = tpu.matmul %117, %119, %cst_73 {dimension_numbers = #tpu.dot_dimension_numbers<[1], [0], [0], [1], [0, 0, 1, 1], [], []>} : vector<5x8xbf16>, vector<8x16xbf16>, vector<5x16xf32> -> vector<5x16xf32>
    %121 = arith.addf %115, %120 : vector<5x16xf32>
    %122 = vector.extract_strided_slice %19 {offsets = [0, 0], sizes = [5, 8], strides = [1, 1]} : vector<7x8xf32> to vector<5x8xf32>
    %123 = arith.truncf %122 : vector<5x8xf32> to vector<5x8xbf16>
    %c3_74 = arith.constant 3 : index
    %c0_75 = arith.constant 0 : index
    %c0_76 = arith.constant 0 : index
    %124 = vector.load %arg3[%c3_74, %c0_75, %c0_76] : memref<9x8x16xbf16, #tpu.memory_space<vmem>>, vector<1x8x16xbf16>
    %125 = vector.shape_cast %124 : vector<1x8x16xbf16> to vector<8x16xbf16>
    %cst_77 = arith.constant dense<0.000000e+00> : vector<5x16xf32>
    %126 = tpu.matmul %123, %125, %cst_77 {dimension_numbers = #tpu.dot_dimension_numbers<[1], [0], [0], [1], [0, 0, 1, 1], [], []>} : vector<5x8xbf16>, vector<8x16xbf16>, vector<5x16xf32> -> vector<5x16xf32>
    %127 = arith.addf %121, %126 : vector<5x16xf32>
    %128 = vector.extract_strided_slice %19 {offsets = [1, 0], sizes = [5, 8], strides = [1, 1]} : vector<7x8xf32> to vector<5x8xf32>
    %129 = arith.truncf %128 : vector<5x8xf32> to vector<5x8xbf16>
    %c4_78 = arith.constant 4 : index
    %c0_79 = arith.constant 0 : index
    %c0_80 = arith.constant 0 : index
    %130 = vector.load %arg3[%c4_78, %c0_79, %c0_80] : memref<9x8x16xbf16, #tpu.memory_space<vmem>>, vector<1x8x16xbf16>
    %131 = vector.shape_cast %130 : vector<1x8x16xbf16> to vector<8x16xbf16>
    %cst_81 = arith.constant dense<0.000000e+00> : vector<5x16xf32>
    %132 = tpu.matmul %129, %131, %cst_81 {dimension_numbers = #tpu.dot_dimension_numbers<[1], [0], [0], [1], [0, 0, 1, 1], [], []>} : vector<5x8xbf16>, vector<8x16xbf16>, vector<5x16xf32> -> vector<5x16xf32>
    %133 = arith.addf %127, %132 : vector<5x16xf32>
    %134 = vector.extract_strided_slice %19 {offsets = [2, 0], sizes = [5, 8], strides = [1, 1]} : vector<7x8xf32> to vector<5x8xf32>
    %135 = arith.truncf %134 : vector<5x8xf32> to vector<5x8xbf16>
    %c5_82 = arith.constant 5 : index
    %c0_83 = arith.constant 0 : index
    %c0_84 = arith.constant 0 : index
    %136 = vector.load %arg3[%c5_82, %c0_83, %c0_84] : memref<9x8x16xbf16, #tpu.memory_space<vmem>>, vector<1x8x16xbf16>
    %137 = vector.shape_cast %136 : vector<1x8x16xbf16> to vector<8x16xbf16>
    %cst_85 = arith.constant dense<0.000000e+00> : vector<5x16xf32>
    %138 = tpu.matmul %135, %137, %cst_85 {dimension_numbers = #tpu.dot_dimension_numbers<[1], [0], [0], [1], [0, 0, 1, 1], [], []>} : vector<5x8xbf16>, vector<8x16xbf16>, vector<5x16xf32> -> vector<5x16xf32>
    %139 = arith.addf %133, %138 : vector<5x16xf32>
    %140 = vector.extract_strided_slice %25 {offsets = [0, 0], sizes = [5, 8], strides = [1, 1]} : vector<7x8xf32> to vector<5x8xf32>
    %141 = arith.truncf %140 : vector<5x8xf32> to vector<5x8xbf16>
    %c6_86 = arith.constant 6 : index
    %c0_87 = arith.constant 0 : index
    %c0_88 = arith.constant 0 : index
    %142 = vector.load %arg3[%c6_86, %c0_87, %c0_88] : memref<9x8x16xbf16, #tpu.memory_space<vmem>>, vector<1x8x16xbf16>
    %143 = vector.shape_cast %142 : vector<1x8x16xbf16> to vector<8x16xbf16>
    %cst_89 = arith.constant dense<0.000000e+00> : vector<5x16xf32>
    %144 = tpu.matmul %141, %143, %cst_89 {dimension_numbers = #tpu.dot_dimension_numbers<[1], [0], [0], [1], [0, 0, 1, 1], [], []>} : vector<5x8xbf16>, vector<8x16xbf16>, vector<5x16xf32> -> vector<5x16xf32>
    %145 = arith.addf %139, %144 : vector<5x16xf32>
    %146 = vector.extract_strided_slice %25 {offsets = [1, 0], sizes = [5, 8], strides = [1, 1]} : vector<7x8xf32> to vector<5x8xf32>
    %147 = arith.truncf %146 : vector<5x8xf32> to vector<5x8xbf16>
    %c7_90 = arith.constant 7 : index
    %c0_91 = arith.constant 0 : index
    %c0_92 = arith.constant 0 : index
    %148 = vector.load %arg3[%c7_90, %c0_91, %c0_92] : memref<9x8x16xbf16, #tpu.memory_space<vmem>>, vector<1x8x16xbf16>
    %149 = vector.shape_cast %148 : vector<1x8x16xbf16> to vector<8x16xbf16>
    %cst_93 = arith.constant dense<0.000000e+00> : vector<5x16xf32>
    %150 = tpu.matmul %147, %149, %cst_93 {dimension_numbers = #tpu.dot_dimension_numbers<[1], [0], [0], [1], [0, 0, 1, 1], [], []>} : vector<5x8xbf16>, vector<8x16xbf16>, vector<5x16xf32> -> vector<5x16xf32>
    %151 = arith.addf %145, %150 : vector<5x16xf32>
    %152 = vector.extract_strided_slice %25 {offsets = [2, 0], sizes = [5, 8], strides = [1, 1]} : vector<7x8xf32> to vector<5x8xf32>
    %153 = arith.truncf %152 : vector<5x8xf32> to vector<5x8xbf16>
    %c8_94 = arith.constant 8 : index
    %c0_95 = arith.constant 0 : index
    %c0_96 = arith.constant 0 : index
    %154 = vector.load %arg3[%c8_94, %c0_95, %c0_96] : memref<9x8x16xbf16, #tpu.memory_space<vmem>>, vector<1x8x16xbf16>
    %155 = vector.shape_cast %154 : vector<1x8x16xbf16> to vector<8x16xbf16>
    %cst_97 = arith.constant dense<0.000000e+00> : vector<5x16xf32>
    %156 = tpu.matmul %153, %155, %cst_97 {dimension_numbers = #tpu.dot_dimension_numbers<[1], [0], [0], [1], [0, 0, 1, 1], [], []>} : vector<5x8xbf16>, vector<8x16xbf16>, vector<5x16xf32> -> vector<5x16xf32>
    %157 = arith.addf %151, %156 : vector<5x16xf32>
    %158 = vector.broadcast %44 : vector<1x16xf32> to vector<5x16xf32>
    %159 = arith.addf %157, %158 : vector<5x16xf32>
    %160 = math.tanh %159 : vector<5x16xf32>
    %cst_98 = arith.constant 0.000000e+00 : f32
    %161 = vector.broadcast %cst_98 : f32 to vector<5x16xf32>
    %162 = vector.extract_strided_slice %19 {offsets = [0, 0], sizes = [5, 8], strides = [1, 1]} : vector<7x8xf32> to vector<5x8xf32>
    %163 = arith.truncf %162 : vector<5x8xf32> to vector<5x8xbf16>
    %c0_99 = arith.constant 0 : index
    %c0_100 = arith.constant 0 : index
    %c0_101 = arith.constant 0 : index
    %164 = vector.load %arg3[%c0_99, %c0_100, %c0_101] : memref<9x8x16xbf16, #tpu.memory_space<vmem>>, vector<1x8x16xbf16>
    %165 = vector.shape_cast %164 : vector<1x8x16xbf16> to vector<8x16xbf16>
    %cst_102 = arith.constant dense<0.000000e+00> : vector<5x16xf32>
    %166 = tpu.matmul %163, %165, %cst_102 {dimension_numbers = #tpu.dot_dimension_numbers<[1], [0], [0], [1], [0, 0, 1, 1], [], []>} : vector<5x8xbf16>, vector<8x16xbf16>, vector<5x16xf32> -> vector<5x16xf32>
    %167 = arith.addf %161, %166 : vector<5x16xf32>
    %168 = vector.extract_strided_slice %19 {offsets = [1, 0], sizes = [5, 8], strides = [1, 1]} : vector<7x8xf32> to vector<5x8xf32>
    %169 = arith.truncf %168 : vector<5x8xf32> to vector<5x8xbf16>
    %c1_103 = arith.constant 1 : index
    %c0_104 = arith.constant 0 : index
    %c0_105 = arith.constant 0 : index
    %170 = vector.load %arg3[%c1_103, %c0_104, %c0_105] : memref<9x8x16xbf16, #tpu.memory_space<vmem>>, vector<1x8x16xbf16>
    %171 = vector.shape_cast %170 : vector<1x8x16xbf16> to vector<8x16xbf16>
    %cst_106 = arith.constant dense<0.000000e+00> : vector<5x16xf32>
    %172 = tpu.matmul %169, %171, %cst_106 {dimension_numbers = #tpu.dot_dimension_numbers<[1], [0], [0], [1], [0, 0, 1, 1], [], []>} : vector<5x8xbf16>, vector<8x16xbf16>, vector<5x16xf32> -> vector<5x16xf32>
    %173 = arith.addf %167, %172 : vector<5x16xf32>
    %174 = vector.extract_strided_slice %19 {offsets = [2, 0], sizes = [5, 8], strides = [1, 1]} : vector<7x8xf32> to vector<5x8xf32>
    %175 = arith.truncf %174 : vector<5x8xf32> to vector<5x8xbf16>
    %c2_107 = arith.constant 2 : index
    %c0_108 = arith.constant 0 : index
    %c0_109 = arith.constant 0 : index
    %176 = vector.load %arg3[%c2_107, %c0_108, %c0_109] : memref<9x8x16xbf16, #tpu.memory_space<vmem>>, vector<1x8x16xbf16>
    %177 = vector.shape_cast %176 : vector<1x8x16xbf16> to vector<8x16xbf16>
    %cst_110 = arith.constant dense<0.000000e+00> : vector<5x16xf32>
    %178 = tpu.matmul %175, %177, %cst_110 {dimension_numbers = #tpu.dot_dimension_numbers<[1], [0], [0], [1], [0, 0, 1, 1], [], []>} : vector<5x8xbf16>, vector<8x16xbf16>, vector<5x16xf32> -> vector<5x16xf32>
    %179 = arith.addf %173, %178 : vector<5x16xf32>
    %180 = vector.extract_strided_slice %25 {offsets = [0, 0], sizes = [5, 8], strides = [1, 1]} : vector<7x8xf32> to vector<5x8xf32>
    %181 = arith.truncf %180 : vector<5x8xf32> to vector<5x8xbf16>
    %c3_111 = arith.constant 3 : index
    %c0_112 = arith.constant 0 : index
    %c0_113 = arith.constant 0 : index
    %182 = vector.load %arg3[%c3_111, %c0_112, %c0_113] : memref<9x8x16xbf16, #tpu.memory_space<vmem>>, vector<1x8x16xbf16>
    %183 = vector.shape_cast %182 : vector<1x8x16xbf16> to vector<8x16xbf16>
    %cst_114 = arith.constant dense<0.000000e+00> : vector<5x16xf32>
    %184 = tpu.matmul %181, %183, %cst_114 {dimension_numbers = #tpu.dot_dimension_numbers<[1], [0], [0], [1], [0, 0, 1, 1], [], []>} : vector<5x8xbf16>, vector<8x16xbf16>, vector<5x16xf32> -> vector<5x16xf32>
    %185 = arith.addf %179, %184 : vector<5x16xf32>
    %186 = vector.extract_strided_slice %25 {offsets = [1, 0], sizes = [5, 8], strides = [1, 1]} : vector<7x8xf32> to vector<5x8xf32>
    %187 = arith.truncf %186 : vector<5x8xf32> to vector<5x8xbf16>
    %c4_115 = arith.constant 4 : index
    %c0_116 = arith.constant 0 : index
    %c0_117 = arith.constant 0 : index
    %188 = vector.load %arg3[%c4_115, %c0_116, %c0_117] : memref<9x8x16xbf16, #tpu.memory_space<vmem>>, vector<1x8x16xbf16>
    %189 = vector.shape_cast %188 : vector<1x8x16xbf16> to vector<8x16xbf16>
    %cst_118 = arith.constant dense<0.000000e+00> : vector<5x16xf32>
    %190 = tpu.matmul %187, %189, %cst_118 {dimension_numbers = #tpu.dot_dimension_numbers<[1], [0], [0], [1], [0, 0, 1, 1], [], []>} : vector<5x8xbf16>, vector<8x16xbf16>, vector<5x16xf32> -> vector<5x16xf32>
    %191 = arith.addf %185, %190 : vector<5x16xf32>
    %192 = vector.extract_strided_slice %25 {offsets = [2, 0], sizes = [5, 8], strides = [1, 1]} : vector<7x8xf32> to vector<5x8xf32>
    %193 = arith.truncf %192 : vector<5x8xf32> to vector<5x8xbf16>
    %c5_119 = arith.constant 5 : index
    %c0_120 = arith.constant 0 : index
    %c0_121 = arith.constant 0 : index
    %194 = vector.load %arg3[%c5_119, %c0_120, %c0_121] : memref<9x8x16xbf16, #tpu.memory_space<vmem>>, vector<1x8x16xbf16>
    %195 = vector.shape_cast %194 : vector<1x8x16xbf16> to vector<8x16xbf16>
    %cst_122 = arith.constant dense<0.000000e+00> : vector<5x16xf32>
    %196 = tpu.matmul %193, %195, %cst_122 {dimension_numbers = #tpu.dot_dimension_numbers<[1], [0], [0], [1], [0, 0, 1, 1], [], []>} : vector<5x8xbf16>, vector<8x16xbf16>, vector<5x16xf32> -> vector<5x16xf32>
    %197 = arith.addf %191, %196 : vector<5x16xf32>
    %198 = vector.extract_strided_slice %31 {offsets = [0, 0], sizes = [5, 8], strides = [1, 1]} : vector<7x8xf32> to vector<5x8xf32>
    %199 = arith.truncf %198 : vector<5x8xf32> to vector<5x8xbf16>
    %c6_123 = arith.constant 6 : index
    %c0_124 = arith.constant 0 : index
    %c0_125 = arith.constant 0 : index
    %200 = vector.load %arg3[%c6_123, %c0_124, %c0_125] : memref<9x8x16xbf16, #tpu.memory_space<vmem>>, vector<1x8x16xbf16>
    %201 = vector.shape_cast %200 : vector<1x8x16xbf16> to vector<8x16xbf16>
    %cst_126 = arith.constant dense<0.000000e+00> : vector<5x16xf32>
    %202 = tpu.matmul %199, %201, %cst_126 {dimension_numbers = #tpu.dot_dimension_numbers<[1], [0], [0], [1], [0, 0, 1, 1], [], []>} : vector<5x8xbf16>, vector<8x16xbf16>, vector<5x16xf32> -> vector<5x16xf32>
    %203 = arith.addf %197, %202 : vector<5x16xf32>
    %204 = vector.extract_strided_slice %31 {offsets = [1, 0], sizes = [5, 8], strides = [1, 1]} : vector<7x8xf32> to vector<5x8xf32>
    %205 = arith.truncf %204 : vector<5x8xf32> to vector<5x8xbf16>
    %c7_127 = arith.constant 7 : index
    %c0_128 = arith.constant 0 : index
    %c0_129 = arith.constant 0 : index
    %206 = vector.load %arg3[%c7_127, %c0_128, %c0_129] : memref<9x8x16xbf16, #tpu.memory_space<vmem>>, vector<1x8x16xbf16>
    %207 = vector.shape_cast %206 : vector<1x8x16xbf16> to vector<8x16xbf16>
    %cst_130 = arith.constant dense<0.000000e+00> : vector<5x16xf32>
    %208 = tpu.matmul %205, %207, %cst_130 {dimension_numbers = #tpu.dot_dimension_numbers<[1], [0], [0], [1], [0, 0, 1, 1], [], []>} : vector<5x8xbf16>, vector<8x16xbf16>, vector<5x16xf32> -> vector<5x16xf32>
    %209 = arith.addf %203, %208 : vector<5x16xf32>
    %210 = vector.extract_strided_slice %31 {offsets = [2, 0], sizes = [5, 8], strides = [1, 1]} : vector<7x8xf32> to vector<5x8xf32>
    %211 = arith.truncf %210 : vector<5x8xf32> to vector<5x8xbf16>
    %c8_131 = arith.constant 8 : index
    %c0_132 = arith.constant 0 : index
    %c0_133 = arith.constant 0 : index
    %212 = vector.load %arg3[%c8_131, %c0_132, %c0_133] : memref<9x8x16xbf16, #tpu.memory_space<vmem>>, vector<1x8x16xbf16>
    %213 = vector.shape_cast %212 : vector<1x8x16xbf16> to vector<8x16xbf16>
    %cst_134 = arith.constant dense<0.000000e+00> : vector<5x16xf32>
    %214 = tpu.matmul %211, %213, %cst_134 {dimension_numbers = #tpu.dot_dimension_numbers<[1], [0], [0], [1], [0, 0, 1, 1], [], []>} : vector<5x8xbf16>, vector<8x16xbf16>, vector<5x16xf32> -> vector<5x16xf32>
    %215 = arith.addf %209, %214 : vector<5x16xf32>
    %216 = vector.broadcast %44 : vector<1x16xf32> to vector<5x16xf32>
    %217 = arith.addf %215, %216 : vector<5x16xf32>
    %218 = math.tanh %217 : vector<5x16xf32>
    %cst_135 = arith.constant 0.000000e+00 : f32
    %219 = vector.broadcast %cst_135 : f32 to vector<5x16xf32>
    %220 = vector.extract_strided_slice %25 {offsets = [0, 0], sizes = [5, 8], strides = [1, 1]} : vector<7x8xf32> to vector<5x8xf32>
    %221 = arith.truncf %220 : vector<5x8xf32> to vector<5x8xbf16>
    %c0_136 = arith.constant 0 : index
    %c0_137 = arith.constant 0 : index
    %c0_138 = arith.constant 0 : index
    %222 = vector.load %arg3[%c0_136, %c0_137, %c0_138] : memref<9x8x16xbf16, #tpu.memory_space<vmem>>, vector<1x8x16xbf16>
    %223 = vector.shape_cast %222 : vector<1x8x16xbf16> to vector<8x16xbf16>
    %cst_139 = arith.constant dense<0.000000e+00> : vector<5x16xf32>
    %224 = tpu.matmul %221, %223, %cst_139 {dimension_numbers = #tpu.dot_dimension_numbers<[1], [0], [0], [1], [0, 0, 1, 1], [], []>} : vector<5x8xbf16>, vector<8x16xbf16>, vector<5x16xf32> -> vector<5x16xf32>
    %225 = arith.addf %219, %224 : vector<5x16xf32>
    %226 = vector.extract_strided_slice %25 {offsets = [1, 0], sizes = [5, 8], strides = [1, 1]} : vector<7x8xf32> to vector<5x8xf32>
    %227 = arith.truncf %226 : vector<5x8xf32> to vector<5x8xbf16>
    %c1_140 = arith.constant 1 : index
    %c0_141 = arith.constant 0 : index
    %c0_142 = arith.constant 0 : index
    %228 = vector.load %arg3[%c1_140, %c0_141, %c0_142] : memref<9x8x16xbf16, #tpu.memory_space<vmem>>, vector<1x8x16xbf16>
    %229 = vector.shape_cast %228 : vector<1x8x16xbf16> to vector<8x16xbf16>
    %cst_143 = arith.constant dense<0.000000e+00> : vector<5x16xf32>
    %230 = tpu.matmul %227, %229, %cst_143 {dimension_numbers = #tpu.dot_dimension_numbers<[1], [0], [0], [1], [0, 0, 1, 1], [], []>} : vector<5x8xbf16>, vector<8x16xbf16>, vector<5x16xf32> -> vector<5x16xf32>
    %231 = arith.addf %225, %230 : vector<5x16xf32>
    %232 = vector.extract_strided_slice %25 {offsets = [2, 0], sizes = [5, 8], strides = [1, 1]} : vector<7x8xf32> to vector<5x8xf32>
    %233 = arith.truncf %232 : vector<5x8xf32> to vector<5x8xbf16>
    %c2_144 = arith.constant 2 : index
    %c0_145 = arith.constant 0 : index
    %c0_146 = arith.constant 0 : index
    %234 = vector.load %arg3[%c2_144, %c0_145, %c0_146] : memref<9x8x16xbf16, #tpu.memory_space<vmem>>, vector<1x8x16xbf16>
    %235 = vector.shape_cast %234 : vector<1x8x16xbf16> to vector<8x16xbf16>
    %cst_147 = arith.constant dense<0.000000e+00> : vector<5x16xf32>
    %236 = tpu.matmul %233, %235, %cst_147 {dimension_numbers = #tpu.dot_dimension_numbers<[1], [0], [0], [1], [0, 0, 1, 1], [], []>} : vector<5x8xbf16>, vector<8x16xbf16>, vector<5x16xf32> -> vector<5x16xf32>
    %237 = arith.addf %231, %236 : vector<5x16xf32>
    %238 = vector.extract_strided_slice %31 {offsets = [0, 0], sizes = [5, 8], strides = [1, 1]} : vector<7x8xf32> to vector<5x8xf32>
    %239 = arith.truncf %238 : vector<5x8xf32> to vector<5x8xbf16>
    %c3_148 = arith.constant 3 : index
    %c0_149 = arith.constant 0 : index
    %c0_150 = arith.constant 0 : index
    %240 = vector.load %arg3[%c3_148, %c0_149, %c0_150] : memref<9x8x16xbf16, #tpu.memory_space<vmem>>, vector<1x8x16xbf16>
    %241 = vector.shape_cast %240 : vector<1x8x16xbf16> to vector<8x16xbf16>
    %cst_151 = arith.constant dense<0.000000e+00> : vector<5x16xf32>
    %242 = tpu.matmul %239, %241, %cst_151 {dimension_numbers = #tpu.dot_dimension_numbers<[1], [0], [0], [1], [0, 0, 1, 1], [], []>} : vector<5x8xbf16>, vector<8x16xbf16>, vector<5x16xf32> -> vector<5x16xf32>
    %243 = arith.addf %237, %242 : vector<5x16xf32>
    %244 = vector.extract_strided_slice %31 {offsets = [1, 0], sizes = [5, 8], strides = [1, 1]} : vector<7x8xf32> to vector<5x8xf32>
    %245 = arith.truncf %244 : vector<5x8xf32> to vector<5x8xbf16>
    %c4_152 = arith.constant 4 : index
    %c0_153 = arith.constant 0 : index
    %c0_154 = arith.constant 0 : index
    %246 = vector.load %arg3[%c4_152, %c0_153, %c0_154] : memref<9x8x16xbf16, #tpu.memory_space<vmem>>, vector<1x8x16xbf16>
    %247 = vector.shape_cast %246 : vector<1x8x16xbf16> to vector<8x16xbf16>
    %cst_155 = arith.constant dense<0.000000e+00> : vector<5x16xf32>
    %248 = tpu.matmul %245, %247, %cst_155 {dimension_numbers = #tpu.dot_dimension_numbers<[1], [0], [0], [1], [0, 0, 1, 1], [], []>} : vector<5x8xbf16>, vector<8x16xbf16>, vector<5x16xf32> -> vector<5x16xf32>
    %249 = arith.addf %243, %248 : vector<5x16xf32>
    %250 = vector.extract_strided_slice %31 {offsets = [2, 0], sizes = [5, 8], strides = [1, 1]} : vector<7x8xf32> to vector<5x8xf32>
    %251 = arith.truncf %250 : vector<5x8xf32> to vector<5x8xbf16>
    %c5_156 = arith.constant 5 : index
    %c0_157 = arith.constant 0 : index
    %c0_158 = arith.constant 0 : index
    %252 = vector.load %arg3[%c5_156, %c0_157, %c0_158] : memref<9x8x16xbf16, #tpu.memory_space<vmem>>, vector<1x8x16xbf16>
    %253 = vector.shape_cast %252 : vector<1x8x16xbf16> to vector<8x16xbf16>
    %cst_159 = arith.constant dense<0.000000e+00> : vector<5x16xf32>
    %254 = tpu.matmul %251, %253, %cst_159 {dimension_numbers = #tpu.dot_dimension_numbers<[1], [0], [0], [1], [0, 0, 1, 1], [], []>} : vector<5x8xbf16>, vector<8x16xbf16>, vector<5x16xf32> -> vector<5x16xf32>
    %255 = arith.addf %249, %254 : vector<5x16xf32>
    %256 = vector.extract_strided_slice %37 {offsets = [0, 0], sizes = [5, 8], strides = [1, 1]} : vector<7x8xf32> to vector<5x8xf32>
    %257 = arith.truncf %256 : vector<5x8xf32> to vector<5x8xbf16>
    %c6_160 = arith.constant 6 : index
    %c0_161 = arith.constant 0 : index
    %c0_162 = arith.constant 0 : index
    %258 = vector.load %arg3[%c6_160, %c0_161, %c0_162] : memref<9x8x16xbf16, #tpu.memory_space<vmem>>, vector<1x8x16xbf16>
    %259 = vector.shape_cast %258 : vector<1x8x16xbf16> to vector<8x16xbf16>
    %cst_163 = arith.constant dense<0.000000e+00> : vector<5x16xf32>
    %260 = tpu.matmul %257, %259, %cst_163 {dimension_numbers = #tpu.dot_dimension_numbers<[1], [0], [0], [1], [0, 0, 1, 1], [], []>} : vector<5x8xbf16>, vector<8x16xbf16>, vector<5x16xf32> -> vector<5x16xf32>
    %261 = arith.addf %255, %260 : vector<5x16xf32>
    %262 = vector.extract_strided_slice %37 {offsets = [1, 0], sizes = [5, 8], strides = [1, 1]} : vector<7x8xf32> to vector<5x8xf32>
    %263 = arith.truncf %262 : vector<5x8xf32> to vector<5x8xbf16>
    %c7_164 = arith.constant 7 : index
    %c0_165 = arith.constant 0 : index
    %c0_166 = arith.constant 0 : index
    %264 = vector.load %arg3[%c7_164, %c0_165, %c0_166] : memref<9x8x16xbf16, #tpu.memory_space<vmem>>, vector<1x8x16xbf16>
    %265 = vector.shape_cast %264 : vector<1x8x16xbf16> to vector<8x16xbf16>
    %cst_167 = arith.constant dense<0.000000e+00> : vector<5x16xf32>
    %266 = tpu.matmul %263, %265, %cst_167 {dimension_numbers = #tpu.dot_dimension_numbers<[1], [0], [0], [1], [0, 0, 1, 1], [], []>} : vector<5x8xbf16>, vector<8x16xbf16>, vector<5x16xf32> -> vector<5x16xf32>
    %267 = arith.addf %261, %266 : vector<5x16xf32>
    %268 = vector.extract_strided_slice %37 {offsets = [2, 0], sizes = [5, 8], strides = [1, 1]} : vector<7x8xf32> to vector<5x8xf32>
    %269 = arith.truncf %268 : vector<5x8xf32> to vector<5x8xbf16>
    %c8_168 = arith.constant 8 : index
    %c0_169 = arith.constant 0 : index
    %c0_170 = arith.constant 0 : index
    %270 = vector.load %arg3[%c8_168, %c0_169, %c0_170] : memref<9x8x16xbf16, #tpu.memory_space<vmem>>, vector<1x8x16xbf16>
    %271 = vector.shape_cast %270 : vector<1x8x16xbf16> to vector<8x16xbf16>
    %cst_171 = arith.constant dense<0.000000e+00> : vector<5x16xf32>
    %272 = tpu.matmul %269, %271, %cst_171 {dimension_numbers = #tpu.dot_dimension_numbers<[1], [0], [0], [1], [0, 0, 1, 1], [], []>} : vector<5x8xbf16>, vector<8x16xbf16>, vector<5x16xf32> -> vector<5x16xf32>
    %273 = arith.addf %267, %272 : vector<5x16xf32>
    %274 = vector.broadcast %44 : vector<1x16xf32> to vector<5x16xf32>
    %275 = arith.addf %273, %274 : vector<5x16xf32>
    %276 = math.tanh %275 : vector<5x16xf32>
    %cst_172 = arith.constant 0.000000e+00 : f32
    %277 = vector.broadcast %cst_172 : f32 to vector<5x16xf32>
    %278 = vector.extract_strided_slice %31 {offsets = [0, 0], sizes = [5, 8], strides = [1, 1]} : vector<7x8xf32> to vector<5x8xf32>
    %279 = arith.truncf %278 : vector<5x8xf32> to vector<5x8xbf16>
    %c0_173 = arith.constant 0 : index
    %c0_174 = arith.constant 0 : index
    %c0_175 = arith.constant 0 : index
    %280 = vector.load %arg3[%c0_173, %c0_174, %c0_175] : memref<9x8x16xbf16, #tpu.memory_space<vmem>>, vector<1x8x16xbf16>
    %281 = vector.shape_cast %280 : vector<1x8x16xbf16> to vector<8x16xbf16>
    %cst_176 = arith.constant dense<0.000000e+00> : vector<5x16xf32>
    %282 = tpu.matmul %279, %281, %cst_176 {dimension_numbers = #tpu.dot_dimension_numbers<[1], [0], [0], [1], [0, 0, 1, 1], [], []>} : vector<5x8xbf16>, vector<8x16xbf16>, vector<5x16xf32> -> vector<5x16xf32>
    %283 = arith.addf %277, %282 : vector<5x16xf32>
    %284 = vector.extract_strided_slice %31 {offsets = [1, 0], sizes = [5, 8], strides = [1, 1]} : vector<7x8xf32> to vector<5x8xf32>
    %285 = arith.truncf %284 : vector<5x8xf32> to vector<5x8xbf16>
    %c1_177 = arith.constant 1 : index
    %c0_178 = arith.constant 0 : index
    %c0_179 = arith.constant 0 : index
    %286 = vector.load %arg3[%c1_177, %c0_178, %c0_179] : memref<9x8x16xbf16, #tpu.memory_space<vmem>>, vector<1x8x16xbf16>
    %287 = vector.shape_cast %286 : vector<1x8x16xbf16> to vector<8x16xbf16>
    %cst_180 = arith.constant dense<0.000000e+00> : vector<5x16xf32>
    %288 = tpu.matmul %285, %287, %cst_180 {dimension_numbers = #tpu.dot_dimension_numbers<[1], [0], [0], [1], [0, 0, 1, 1], [], []>} : vector<5x8xbf16>, vector<8x16xbf16>, vector<5x16xf32> -> vector<5x16xf32>
    %289 = arith.addf %283, %288 : vector<5x16xf32>
    %290 = vector.extract_strided_slice %31 {offsets = [2, 0], sizes = [5, 8], strides = [1, 1]} : vector<7x8xf32> to vector<5x8xf32>
    %291 = arith.truncf %290 : vector<5x8xf32> to vector<5x8xbf16>
    %c2_181 = arith.constant 2 : index
    %c0_182 = arith.constant 0 : index
    %c0_183 = arith.constant 0 : index
    %292 = vector.load %arg3[%c2_181, %c0_182, %c0_183] : memref<9x8x16xbf16, #tpu.memory_space<vmem>>, vector<1x8x16xbf16>
    %293 = vector.shape_cast %292 : vector<1x8x16xbf16> to vector<8x16xbf16>
    %cst_184 = arith.constant dense<0.000000e+00> : vector<5x16xf32>
    %294 = tpu.matmul %291, %293, %cst_184 {dimension_numbers = #tpu.dot_dimension_numbers<[1], [0], [0], [1], [0, 0, 1, 1], [], []>} : vector<5x8xbf16>, vector<8x16xbf16>, vector<5x16xf32> -> vector<5x16xf32>
    %295 = arith.addf %289, %294 : vector<5x16xf32>
    %296 = vector.extract_strided_slice %37 {offsets = [0, 0], sizes = [5, 8], strides = [1, 1]} : vector<7x8xf32> to vector<5x8xf32>
    %297 = arith.truncf %296 : vector<5x8xf32> to vector<5x8xbf16>
    %c3_185 = arith.constant 3 : index
    %c0_186 = arith.constant 0 : index
    %c0_187 = arith.constant 0 : index
    %298 = vector.load %arg3[%c3_185, %c0_186, %c0_187] : memref<9x8x16xbf16, #tpu.memory_space<vmem>>, vector<1x8x16xbf16>
    %299 = vector.shape_cast %298 : vector<1x8x16xbf16> to vector<8x16xbf16>
    %cst_188 = arith.constant dense<0.000000e+00> : vector<5x16xf32>
    %300 = tpu.matmul %297, %299, %cst_188 {dimension_numbers = #tpu.dot_dimension_numbers<[1], [0], [0], [1], [0, 0, 1, 1], [], []>} : vector<5x8xbf16>, vector<8x16xbf16>, vector<5x16xf32> -> vector<5x16xf32>
    %301 = arith.addf %295, %300 : vector<5x16xf32>
    %302 = vector.extract_strided_slice %37 {offsets = [1, 0], sizes = [5, 8], strides = [1, 1]} : vector<7x8xf32> to vector<5x8xf32>
    %303 = arith.truncf %302 : vector<5x8xf32> to vector<5x8xbf16>
    %c4_189 = arith.constant 4 : index
    %c0_190 = arith.constant 0 : index
    %c0_191 = arith.constant 0 : index
    %304 = vector.load %arg3[%c4_189, %c0_190, %c0_191] : memref<9x8x16xbf16, #tpu.memory_space<vmem>>, vector<1x8x16xbf16>
    %305 = vector.shape_cast %304 : vector<1x8x16xbf16> to vector<8x16xbf16>
    %cst_192 = arith.constant dense<0.000000e+00> : vector<5x16xf32>
    %306 = tpu.matmul %303, %305, %cst_192 {dimension_numbers = #tpu.dot_dimension_numbers<[1], [0], [0], [1], [0, 0, 1, 1], [], []>} : vector<5x8xbf16>, vector<8x16xbf16>, vector<5x16xf32> -> vector<5x16xf32>
    %307 = arith.addf %301, %306 : vector<5x16xf32>
    %308 = vector.extract_strided_slice %37 {offsets = [2, 0], sizes = [5, 8], strides = [1, 1]} : vector<7x8xf32> to vector<5x8xf32>
    %309 = arith.truncf %308 : vector<5x8xf32> to vector<5x8xbf16>
    %c5_193 = arith.constant 5 : index
    %c0_194 = arith.constant 0 : index
    %c0_195 = arith.constant 0 : index
    %310 = vector.load %arg3[%c5_193, %c0_194, %c0_195] : memref<9x8x16xbf16, #tpu.memory_space<vmem>>, vector<1x8x16xbf16>
    %311 = vector.shape_cast %310 : vector<1x8x16xbf16> to vector<8x16xbf16>
    %cst_196 = arith.constant dense<0.000000e+00> : vector<5x16xf32>
    %312 = tpu.matmul %309, %311, %cst_196 {dimension_numbers = #tpu.dot_dimension_numbers<[1], [0], [0], [1], [0, 0, 1, 1], [], []>} : vector<5x8xbf16>, vector<8x16xbf16>, vector<5x16xf32> -> vector<5x16xf32>
    %313 = arith.addf %307, %312 : vector<5x16xf32>
    %314 = vector.extract_strided_slice %43 {offsets = [0, 0], sizes = [5, 8], strides = [1, 1]} : vector<7x8xf32> to vector<5x8xf32>
    %315 = arith.truncf %314 : vector<5x8xf32> to vector<5x8xbf16>
    %c6_197 = arith.constant 6 : index
    %c0_198 = arith.constant 0 : index
    %c0_199 = arith.constant 0 : index
    %316 = vector.load %arg3[%c6_197, %c0_198, %c0_199] : memref<9x8x16xbf16, #tpu.memory_space<vmem>>, vector<1x8x16xbf16>
    %317 = vector.shape_cast %316 : vector<1x8x16xbf16> to vector<8x16xbf16>
    %cst_200 = arith.constant dense<0.000000e+00> : vector<5x16xf32>
    %318 = tpu.matmul %315, %317, %cst_200 {dimension_numbers = #tpu.dot_dimension_numbers<[1], [0], [0], [1], [0, 0, 1, 1], [], []>} : vector<5x8xbf16>, vector<8x16xbf16>, vector<5x16xf32> -> vector<5x16xf32>
    %319 = arith.addf %313, %318 : vector<5x16xf32>
    %320 = vector.extract_strided_slice %43 {offsets = [1, 0], sizes = [5, 8], strides = [1, 1]} : vector<7x8xf32> to vector<5x8xf32>
    %321 = arith.truncf %320 : vector<5x8xf32> to vector<5x8xbf16>
    %c7_201 = arith.constant 7 : index
    %c0_202 = arith.constant 0 : index
    %c0_203 = arith.constant 0 : index
    %322 = vector.load %arg3[%c7_201, %c0_202, %c0_203] : memref<9x8x16xbf16, #tpu.memory_space<vmem>>, vector<1x8x16xbf16>
    %323 = vector.shape_cast %322 : vector<1x8x16xbf16> to vector<8x16xbf16>
    %cst_204 = arith.constant dense<0.000000e+00> : vector<5x16xf32>
    %324 = tpu.matmul %321, %323, %cst_204 {dimension_numbers = #tpu.dot_dimension_numbers<[1], [0], [0], [1], [0, 0, 1, 1], [], []>} : vector<5x8xbf16>, vector<8x16xbf16>, vector<5x16xf32> -> vector<5x16xf32>
    %325 = arith.addf %319, %324 : vector<5x16xf32>
    %326 = vector.extract_strided_slice %43 {offsets = [2, 0], sizes = [5, 8], strides = [1, 1]} : vector<7x8xf32> to vector<5x8xf32>
    %327 = arith.truncf %326 : vector<5x8xf32> to vector<5x8xbf16>
    %c8_205 = arith.constant 8 : index
    %c0_206 = arith.constant 0 : index
    %c0_207 = arith.constant 0 : index
    %328 = vector.load %arg3[%c8_205, %c0_206, %c0_207] : memref<9x8x16xbf16, #tpu.memory_space<vmem>>, vector<1x8x16xbf16>
    %329 = vector.shape_cast %328 : vector<1x8x16xbf16> to vector<8x16xbf16>
    %cst_208 = arith.constant dense<0.000000e+00> : vector<5x16xf32>
    %330 = tpu.matmul %327, %329, %cst_208 {dimension_numbers = #tpu.dot_dimension_numbers<[1], [0], [0], [1], [0, 0, 1, 1], [], []>} : vector<5x8xbf16>, vector<8x16xbf16>, vector<5x16xf32> -> vector<5x16xf32>
    %331 = arith.addf %325, %330 : vector<5x16xf32>
    %332 = vector.broadcast %44 : vector<1x16xf32> to vector<5x16xf32>
    %333 = arith.addf %331, %332 : vector<5x16xf32>
    %334 = math.tanh %333 : vector<5x16xf32>
    %c0_209 = arith.constant 0 : index
    %c0_210 = arith.constant 0 : index
    %335 = vector.load %arg8[%c0_209, %c0_210] : memref<1x32xf32, #tpu.memory_space<vmem>>, vector<1x32xf32>
    %336 = vector.extract_strided_slice %102 {offsets = [0, 0], sizes = [1, 16], strides = [1, 1]} : vector<5x16xf32> to vector<1x16xf32>
    %337 = arith.truncf %336 : vector<1x16xf32> to vector<1x16xbf16>
    %c0_211 = arith.constant 0 : index
    %c0_212 = arith.constant 0 : index
    %c0_213 = arith.constant 0 : index
    %338 = vector.load %arg6[%c0_211, %c0_212, %c0_213] : memref<25x16x32xbf16, #tpu.memory_space<vmem>>, vector<1x16x32xbf16>
    %339 = vector.shape_cast %338 : vector<1x16x32xbf16> to vector<16x32xbf16>
    %cst_214 = arith.constant dense<0.000000e+00> : vector<1x32xf32>
    %340 = tpu.matmul %337, %339, %cst_214 {dimension_numbers = #tpu.dot_dimension_numbers<[1], [0], [0], [1], [0, 0, 1, 1], [], []>} : vector<1x16xbf16>, vector<16x32xbf16>, vector<1x32xf32> -> vector<1x32xf32>
    %341 = arith.addf %335, %340 : vector<1x32xf32>
    %342 = vector.extract_strided_slice %102 {offsets = [1, 0], sizes = [1, 16], strides = [1, 1]} : vector<5x16xf32> to vector<1x16xf32>
    %343 = arith.truncf %342 : vector<1x16xf32> to vector<1x16xbf16>
    %c1_215 = arith.constant 1 : index
    %c0_216 = arith.constant 0 : index
    %c0_217 = arith.constant 0 : index
    %344 = vector.load %arg6[%c1_215, %c0_216, %c0_217] : memref<25x16x32xbf16, #tpu.memory_space<vmem>>, vector<1x16x32xbf16>
    %345 = vector.shape_cast %344 : vector<1x16x32xbf16> to vector<16x32xbf16>
    %cst_218 = arith.constant dense<0.000000e+00> : vector<1x32xf32>
    %346 = tpu.matmul %343, %345, %cst_218 {dimension_numbers = #tpu.dot_dimension_numbers<[1], [0], [0], [1], [0, 0, 1, 1], [], []>} : vector<1x16xbf16>, vector<16x32xbf16>, vector<1x32xf32> -> vector<1x32xf32>
    %347 = arith.addf %341, %346 : vector<1x32xf32>
    %348 = vector.extract_strided_slice %102 {offsets = [2, 0], sizes = [1, 16], strides = [1, 1]} : vector<5x16xf32> to vector<1x16xf32>
    %349 = arith.truncf %348 : vector<1x16xf32> to vector<1x16xbf16>
    %c2_219 = arith.constant 2 : index
    %c0_220 = arith.constant 0 : index
    %c0_221 = arith.constant 0 : index
    %350 = vector.load %arg6[%c2_219, %c0_220, %c0_221] : memref<25x16x32xbf16, #tpu.memory_space<vmem>>, vector<1x16x32xbf16>
    %351 = vector.shape_cast %350 : vector<1x16x32xbf16> to vector<16x32xbf16>
    %cst_222 = arith.constant dense<0.000000e+00> : vector<1x32xf32>
    %352 = tpu.matmul %349, %351, %cst_222 {dimension_numbers = #tpu.dot_dimension_numbers<[1], [0], [0], [1], [0, 0, 1, 1], [], []>} : vector<1x16xbf16>, vector<16x32xbf16>, vector<1x32xf32> -> vector<1x32xf32>
    %353 = arith.addf %347, %352 : vector<1x32xf32>
    %354 = vector.extract_strided_slice %102 {offsets = [3, 0], sizes = [1, 16], strides = [1, 1]} : vector<5x16xf32> to vector<1x16xf32>
    %355 = arith.truncf %354 : vector<1x16xf32> to vector<1x16xbf16>
    %c3_223 = arith.constant 3 : index
    %c0_224 = arith.constant 0 : index
    %c0_225 = arith.constant 0 : index
    %356 = vector.load %arg6[%c3_223, %c0_224, %c0_225] : memref<25x16x32xbf16, #tpu.memory_space<vmem>>, vector<1x16x32xbf16>
    %357 = vector.shape_cast %356 : vector<1x16x32xbf16> to vector<16x32xbf16>
    %cst_226 = arith.constant dense<0.000000e+00> : vector<1x32xf32>
    %358 = tpu.matmul %355, %357, %cst_226 {dimension_numbers = #tpu.dot_dimension_numbers<[1], [0], [0], [1], [0, 0, 1, 1], [], []>} : vector<1x16xbf16>, vector<16x32xbf16>, vector<1x32xf32> -> vector<1x32xf32>
    %359 = arith.addf %353, %358 : vector<1x32xf32>
    %360 = vector.extract_strided_slice %102 {offsets = [4, 0], sizes = [1, 16], strides = [1, 1]} : vector<5x16xf32> to vector<1x16xf32>
    %361 = arith.truncf %360 : vector<1x16xf32> to vector<1x16xbf16>
    %c4_227 = arith.constant 4 : index
    %c0_228 = arith.constant 0 : index
    %c0_229 = arith.constant 0 : index
    %362 = vector.load %arg6[%c4_227, %c0_228, %c0_229] : memref<25x16x32xbf16, #tpu.memory_space<vmem>>, vector<1x16x32xbf16>
    %363 = vector.shape_cast %362 : vector<1x16x32xbf16> to vector<16x32xbf16>
    %cst_230 = arith.constant dense<0.000000e+00> : vector<1x32xf32>
    %364 = tpu.matmul %361, %363, %cst_230 {dimension_numbers = #tpu.dot_dimension_numbers<[1], [0], [0], [1], [0, 0, 1, 1], [], []>} : vector<1x16xbf16>, vector<16x32xbf16>, vector<1x32xf32> -> vector<1x32xf32>
    %365 = arith.addf %359, %364 : vector<1x32xf32>
    %366 = vector.extract_strided_slice %160 {offsets = [0, 0], sizes = [1, 16], strides = [1, 1]} : vector<5x16xf32> to vector<1x16xf32>
    %367 = arith.truncf %366 : vector<1x16xf32> to vector<1x16xbf16>
    %c5_231 = arith.constant 5 : index
    %c0_232 = arith.constant 0 : index
    %c0_233 = arith.constant 0 : index
    %368 = vector.load %arg6[%c5_231, %c0_232, %c0_233] : memref<25x16x32xbf16, #tpu.memory_space<vmem>>, vector<1x16x32xbf16>
    %369 = vector.shape_cast %368 : vector<1x16x32xbf16> to vector<16x32xbf16>
    %cst_234 = arith.constant dense<0.000000e+00> : vector<1x32xf32>
    %370 = tpu.matmul %367, %369, %cst_234 {dimension_numbers = #tpu.dot_dimension_numbers<[1], [0], [0], [1], [0, 0, 1, 1], [], []>} : vector<1x16xbf16>, vector<16x32xbf16>, vector<1x32xf32> -> vector<1x32xf32>
    %371 = arith.addf %365, %370 : vector<1x32xf32>
    %372 = vector.extract_strided_slice %160 {offsets = [1, 0], sizes = [1, 16], strides = [1, 1]} : vector<5x16xf32> to vector<1x16xf32>
    %373 = arith.truncf %372 : vector<1x16xf32> to vector<1x16xbf16>
    %c6_235 = arith.constant 6 : index
    %c0_236 = arith.constant 0 : index
    %c0_237 = arith.constant 0 : index
    %374 = vector.load %arg6[%c6_235, %c0_236, %c0_237] : memref<25x16x32xbf16, #tpu.memory_space<vmem>>, vector<1x16x32xbf16>
    %375 = vector.shape_cast %374 : vector<1x16x32xbf16> to vector<16x32xbf16>
    %cst_238 = arith.constant dense<0.000000e+00> : vector<1x32xf32>
    %376 = tpu.matmul %373, %375, %cst_238 {dimension_numbers = #tpu.dot_dimension_numbers<[1], [0], [0], [1], [0, 0, 1, 1], [], []>} : vector<1x16xbf16>, vector<16x32xbf16>, vector<1x32xf32> -> vector<1x32xf32>
    %377 = arith.addf %371, %376 : vector<1x32xf32>
    %378 = vector.extract_strided_slice %160 {offsets = [2, 0], sizes = [1, 16], strides = [1, 1]} : vector<5x16xf32> to vector<1x16xf32>
    %379 = arith.truncf %378 : vector<1x16xf32> to vector<1x16xbf16>
    %c7_239 = arith.constant 7 : index
    %c0_240 = arith.constant 0 : index
    %c0_241 = arith.constant 0 : index
    %380 = vector.load %arg6[%c7_239, %c0_240, %c0_241] : memref<25x16x32xbf16, #tpu.memory_space<vmem>>, vector<1x16x32xbf16>
    %381 = vector.shape_cast %380 : vector<1x16x32xbf16> to vector<16x32xbf16>
    %cst_242 = arith.constant dense<0.000000e+00> : vector<1x32xf32>
    %382 = tpu.matmul %379, %381, %cst_242 {dimension_numbers = #tpu.dot_dimension_numbers<[1], [0], [0], [1], [0, 0, 1, 1], [], []>} : vector<1x16xbf16>, vector<16x32xbf16>, vector<1x32xf32> -> vector<1x32xf32>
    %383 = arith.addf %377, %382 : vector<1x32xf32>
    %384 = vector.extract_strided_slice %160 {offsets = [3, 0], sizes = [1, 16], strides = [1, 1]} : vector<5x16xf32> to vector<1x16xf32>
    %385 = arith.truncf %384 : vector<1x16xf32> to vector<1x16xbf16>
    %c8_243 = arith.constant 8 : index
    %c0_244 = arith.constant 0 : index
    %c0_245 = arith.constant 0 : index
    %386 = vector.load %arg6[%c8_243, %c0_244, %c0_245] : memref<25x16x32xbf16, #tpu.memory_space<vmem>>, vector<1x16x32xbf16>
    %387 = vector.shape_cast %386 : vector<1x16x32xbf16> to vector<16x32xbf16>
    %cst_246 = arith.constant dense<0.000000e+00> : vector<1x32xf32>
    %388 = tpu.matmul %385, %387, %cst_246 {dimension_numbers = #tpu.dot_dimension_numbers<[1], [0], [0], [1], [0, 0, 1, 1], [], []>} : vector<1x16xbf16>, vector<16x32xbf16>, vector<1x32xf32> -> vector<1x32xf32>
    %389 = arith.addf %383, %388 : vector<1x32xf32>
    %390 = vector.extract_strided_slice %160 {offsets = [4, 0], sizes = [1, 16], strides = [1, 1]} : vector<5x16xf32> to vector<1x16xf32>
    %391 = arith.truncf %390 : vector<1x16xf32> to vector<1x16xbf16>
    %c9 = arith.constant 9 : index
    %c0_247 = arith.constant 0 : index
    %c0_248 = arith.constant 0 : index
    %392 = vector.load %arg6[%c9, %c0_247, %c0_248] : memref<25x16x32xbf16, #tpu.memory_space<vmem>>, vector<1x16x32xbf16>
    %393 = vector.shape_cast %392 : vector<1x16x32xbf16> to vector<16x32xbf16>
    %cst_249 = arith.constant dense<0.000000e+00> : vector<1x32xf32>
    %394 = tpu.matmul %391, %393, %cst_249 {dimension_numbers = #tpu.dot_dimension_numbers<[1], [0], [0], [1], [0, 0, 1, 1], [], []>} : vector<1x16xbf16>, vector<16x32xbf16>, vector<1x32xf32> -> vector<1x32xf32>
    %395 = arith.addf %389, %394 : vector<1x32xf32>
    %396 = vector.extract_strided_slice %218 {offsets = [0, 0], sizes = [1, 16], strides = [1, 1]} : vector<5x16xf32> to vector<1x16xf32>
    %397 = arith.truncf %396 : vector<1x16xf32> to vector<1x16xbf16>
    %c10 = arith.constant 10 : index
    %c0_250 = arith.constant 0 : index
    %c0_251 = arith.constant 0 : index
    %398 = vector.load %arg6[%c10, %c0_250, %c0_251] : memref<25x16x32xbf16, #tpu.memory_space<vmem>>, vector<1x16x32xbf16>
    %399 = vector.shape_cast %398 : vector<1x16x32xbf16> to vector<16x32xbf16>
    %cst_252 = arith.constant dense<0.000000e+00> : vector<1x32xf32>
    %400 = tpu.matmul %397, %399, %cst_252 {dimension_numbers = #tpu.dot_dimension_numbers<[1], [0], [0], [1], [0, 0, 1, 1], [], []>} : vector<1x16xbf16>, vector<16x32xbf16>, vector<1x32xf32> -> vector<1x32xf32>
    %401 = arith.addf %395, %400 : vector<1x32xf32>
    %402 = vector.extract_strided_slice %218 {offsets = [1, 0], sizes = [1, 16], strides = [1, 1]} : vector<5x16xf32> to vector<1x16xf32>
    %403 = arith.truncf %402 : vector<1x16xf32> to vector<1x16xbf16>
    %c11 = arith.constant 11 : index
    %c0_253 = arith.constant 0 : index
    %c0_254 = arith.constant 0 : index
    %404 = vector.load %arg6[%c11, %c0_253, %c0_254] : memref<25x16x32xbf16, #tpu.memory_space<vmem>>, vector<1x16x32xbf16>
    %405 = vector.shape_cast %404 : vector<1x16x32xbf16> to vector<16x32xbf16>
    %cst_255 = arith.constant dense<0.000000e+00> : vector<1x32xf32>
    %406 = tpu.matmul %403, %405, %cst_255 {dimension_numbers = #tpu.dot_dimension_numbers<[1], [0], [0], [1], [0, 0, 1, 1], [], []>} : vector<1x16xbf16>, vector<16x32xbf16>, vector<1x32xf32> -> vector<1x32xf32>
    %407 = arith.addf %401, %406 : vector<1x32xf32>
    %408 = vector.extract_strided_slice %218 {offsets = [2, 0], sizes = [1, 16], strides = [1, 1]} : vector<5x16xf32> to vector<1x16xf32>
    %409 = arith.truncf %408 : vector<1x16xf32> to vector<1x16xbf16>
    %c12 = arith.constant 12 : index
    %c0_256 = arith.constant 0 : index
    %c0_257 = arith.constant 0 : index
    %410 = vector.load %arg6[%c12, %c0_256, %c0_257] : memref<25x16x32xbf16, #tpu.memory_space<vmem>>, vector<1x16x32xbf16>
    %411 = vector.shape_cast %410 : vector<1x16x32xbf16> to vector<16x32xbf16>
    %cst_258 = arith.constant dense<0.000000e+00> : vector<1x32xf32>
    %412 = tpu.matmul %409, %411, %cst_258 {dimension_numbers = #tpu.dot_dimension_numbers<[1], [0], [0], [1], [0, 0, 1, 1], [], []>} : vector<1x16xbf16>, vector<16x32xbf16>, vector<1x32xf32> -> vector<1x32xf32>
    %413 = arith.addf %407, %412 : vector<1x32xf32>
    %414 = vector.extract_strided_slice %218 {offsets = [3, 0], sizes = [1, 16], strides = [1, 1]} : vector<5x16xf32> to vector<1x16xf32>
    %415 = arith.truncf %414 : vector<1x16xf32> to vector<1x16xbf16>
    %c13 = arith.constant 13 : index
    %c0_259 = arith.constant 0 : index
    %c0_260 = arith.constant 0 : index
    %416 = vector.load %arg6[%c13, %c0_259, %c0_260] : memref<25x16x32xbf16, #tpu.memory_space<vmem>>, vector<1x16x32xbf16>
    %417 = vector.shape_cast %416 : vector<1x16x32xbf16> to vector<16x32xbf16>
    %cst_261 = arith.constant dense<0.000000e+00> : vector<1x32xf32>
    %418 = tpu.matmul %415, %417, %cst_261 {dimension_numbers = #tpu.dot_dimension_numbers<[1], [0], [0], [1], [0, 0, 1, 1], [], []>} : vector<1x16xbf16>, vector<16x32xbf16>, vector<1x32xf32> -> vector<1x32xf32>
    %419 = arith.addf %413, %418 : vector<1x32xf32>
    %420 = vector.extract_strided_slice %218 {offsets = [4, 0], sizes = [1, 16], strides = [1, 1]} : vector<5x16xf32> to vector<1x16xf32>
    %421 = arith.truncf %420 : vector<1x16xf32> to vector<1x16xbf16>
    %c14 = arith.constant 14 : index
    %c0_262 = arith.constant 0 : index
    %c0_263 = arith.constant 0 : index
    %422 = vector.load %arg6[%c14, %c0_262, %c0_263] : memref<25x16x32xbf16, #tpu.memory_space<vmem>>, vector<1x16x32xbf16>
    %423 = vector.shape_cast %422 : vector<1x16x32xbf16> to vector<16x32xbf16>
    %cst_264 = arith.constant dense<0.000000e+00> : vector<1x32xf32>
    %424 = tpu.matmul %421, %423, %cst_264 {dimension_numbers = #tpu.dot_dimension_numbers<[1], [0], [0], [1], [0, 0, 1, 1], [], []>} : vector<1x16xbf16>, vector<16x32xbf16>, vector<1x32xf32> -> vector<1x32xf32>
    %425 = arith.addf %419, %424 : vector<1x32xf32>
    %426 = vector.extract_strided_slice %276 {offsets = [0, 0], sizes = [1, 16], strides = [1, 1]} : vector<5x16xf32> to vector<1x16xf32>
    %427 = arith.truncf %426 : vector<1x16xf32> to vector<1x16xbf16>
    %c15 = arith.constant 15 : index
    %c0_265 = arith.constant 0 : index
    %c0_266 = arith.constant 0 : index
    %428 = vector.load %arg6[%c15, %c0_265, %c0_266] : memref<25x16x32xbf16, #tpu.memory_space<vmem>>, vector<1x16x32xbf16>
    %429 = vector.shape_cast %428 : vector<1x16x32xbf16> to vector<16x32xbf16>
    %cst_267 = arith.constant dense<0.000000e+00> : vector<1x32xf32>
    %430 = tpu.matmul %427, %429, %cst_267 {dimension_numbers = #tpu.dot_dimension_numbers<[1], [0], [0], [1], [0, 0, 1, 1], [], []>} : vector<1x16xbf16>, vector<16x32xbf16>, vector<1x32xf32> -> vector<1x32xf32>
    %431 = arith.addf %425, %430 : vector<1x32xf32>
    %432 = vector.extract_strided_slice %276 {offsets = [1, 0], sizes = [1, 16], strides = [1, 1]} : vector<5x16xf32> to vector<1x16xf32>
    %433 = arith.truncf %432 : vector<1x16xf32> to vector<1x16xbf16>
    %c16 = arith.constant 16 : index
    %c0_268 = arith.constant 0 : index
    %c0_269 = arith.constant 0 : index
    %434 = vector.load %arg6[%c16, %c0_268, %c0_269] : memref<25x16x32xbf16, #tpu.memory_space<vmem>>, vector<1x16x32xbf16>
    %435 = vector.shape_cast %434 : vector<1x16x32xbf16> to vector<16x32xbf16>
    %cst_270 = arith.constant dense<0.000000e+00> : vector<1x32xf32>
    %436 = tpu.matmul %433, %435, %cst_270 {dimension_numbers = #tpu.dot_dimension_numbers<[1], [0], [0], [1], [0, 0, 1, 1], [], []>} : vector<1x16xbf16>, vector<16x32xbf16>, vector<1x32xf32> -> vector<1x32xf32>
    %437 = arith.addf %431, %436 : vector<1x32xf32>
    %438 = vector.extract_strided_slice %276 {offsets = [2, 0], sizes = [1, 16], strides = [1, 1]} : vector<5x16xf32> to vector<1x16xf32>
    %439 = arith.truncf %438 : vector<1x16xf32> to vector<1x16xbf16>
    %c17 = arith.constant 17 : index
    %c0_271 = arith.constant 0 : index
    %c0_272 = arith.constant 0 : index
    %440 = vector.load %arg6[%c17, %c0_271, %c0_272] : memref<25x16x32xbf16, #tpu.memory_space<vmem>>, vector<1x16x32xbf16>
    %441 = vector.shape_cast %440 : vector<1x16x32xbf16> to vector<16x32xbf16>
    %cst_273 = arith.constant dense<0.000000e+00> : vector<1x32xf32>
    %442 = tpu.matmul %439, %441, %cst_273 {dimension_numbers = #tpu.dot_dimension_numbers<[1], [0], [0], [1], [0, 0, 1, 1], [], []>} : vector<1x16xbf16>, vector<16x32xbf16>, vector<1x32xf32> -> vector<1x32xf32>
    %443 = arith.addf %437, %442 : vector<1x32xf32>
    %444 = vector.extract_strided_slice %276 {offsets = [3, 0], sizes = [1, 16], strides = [1, 1]} : vector<5x16xf32> to vector<1x16xf32>
    %445 = arith.truncf %444 : vector<1x16xf32> to vector<1x16xbf16>
    %c18 = arith.constant 18 : index
    %c0_274 = arith.constant 0 : index
    %c0_275 = arith.constant 0 : index
    %446 = vector.load %arg6[%c18, %c0_274, %c0_275] : memref<25x16x32xbf16, #tpu.memory_space<vmem>>, vector<1x16x32xbf16>
    %447 = vector.shape_cast %446 : vector<1x16x32xbf16> to vector<16x32xbf16>
    %cst_276 = arith.constant dense<0.000000e+00> : vector<1x32xf32>
    %448 = tpu.matmul %445, %447, %cst_276 {dimension_numbers = #tpu.dot_dimension_numbers<[1], [0], [0], [1], [0, 0, 1, 1], [], []>} : vector<1x16xbf16>, vector<16x32xbf16>, vector<1x32xf32> -> vector<1x32xf32>
    %449 = arith.addf %443, %448 : vector<1x32xf32>
    %450 = vector.extract_strided_slice %276 {offsets = [4, 0], sizes = [1, 16], strides = [1, 1]} : vector<5x16xf32> to vector<1x16xf32>
    %451 = arith.truncf %450 : vector<1x16xf32> to vector<1x16xbf16>
    %c19 = arith.constant 19 : index
    %c0_277 = arith.constant 0 : index
    %c0_278 = arith.constant 0 : index
    %452 = vector.load %arg6[%c19, %c0_277, %c0_278] : memref<25x16x32xbf16, #tpu.memory_space<vmem>>, vector<1x16x32xbf16>
    %453 = vector.shape_cast %452 : vector<1x16x32xbf16> to vector<16x32xbf16>
    %cst_279 = arith.constant dense<0.000000e+00> : vector<1x32xf32>
    %454 = tpu.matmul %451, %453, %cst_279 {dimension_numbers = #tpu.dot_dimension_numbers<[1], [0], [0], [1], [0, 0, 1, 1], [], []>} : vector<1x16xbf16>, vector<16x32xbf16>, vector<1x32xf32> -> vector<1x32xf32>
    %455 = arith.addf %449, %454 : vector<1x32xf32>
    %456 = vector.extract_strided_slice %334 {offsets = [0, 0], sizes = [1, 16], strides = [1, 1]} : vector<5x16xf32> to vector<1x16xf32>
    %457 = arith.truncf %456 : vector<1x16xf32> to vector<1x16xbf16>
    %c20 = arith.constant 20 : index
    %c0_280 = arith.constant 0 : index
    %c0_281 = arith.constant 0 : index
    %458 = vector.load %arg6[%c20, %c0_280, %c0_281] : memref<25x16x32xbf16, #tpu.memory_space<vmem>>, vector<1x16x32xbf16>
    %459 = vector.shape_cast %458 : vector<1x16x32xbf16> to vector<16x32xbf16>
    %cst_282 = arith.constant dense<0.000000e+00> : vector<1x32xf32>
    %460 = tpu.matmul %457, %459, %cst_282 {dimension_numbers = #tpu.dot_dimension_numbers<[1], [0], [0], [1], [0, 0, 1, 1], [], []>} : vector<1x16xbf16>, vector<16x32xbf16>, vector<1x32xf32> -> vector<1x32xf32>
    %461 = arith.addf %455, %460 : vector<1x32xf32>
    %462 = vector.extract_strided_slice %334 {offsets = [1, 0], sizes = [1, 16], strides = [1, 1]} : vector<5x16xf32> to vector<1x16xf32>
    %463 = arith.truncf %462 : vector<1x16xf32> to vector<1x16xbf16>
    %c21 = arith.constant 21 : index
    %c0_283 = arith.constant 0 : index
    %c0_284 = arith.constant 0 : index
    %464 = vector.load %arg6[%c21, %c0_283, %c0_284] : memref<25x16x32xbf16, #tpu.memory_space<vmem>>, vector<1x16x32xbf16>
    %465 = vector.shape_cast %464 : vector<1x16x32xbf16> to vector<16x32xbf16>
    %cst_285 = arith.constant dense<0.000000e+00> : vector<1x32xf32>
    %466 = tpu.matmul %463, %465, %cst_285 {dimension_numbers = #tpu.dot_dimension_numbers<[1], [0], [0], [1], [0, 0, 1, 1], [], []>} : vector<1x16xbf16>, vector<16x32xbf16>, vector<1x32xf32> -> vector<1x32xf32>
    %467 = arith.addf %461, %466 : vector<1x32xf32>
    %468 = vector.extract_strided_slice %334 {offsets = [2, 0], sizes = [1, 16], strides = [1, 1]} : vector<5x16xf32> to vector<1x16xf32>
    %469 = arith.truncf %468 : vector<1x16xf32> to vector<1x16xbf16>
    %c22 = arith.constant 22 : index
    %c0_286 = arith.constant 0 : index
    %c0_287 = arith.constant 0 : index
    %470 = vector.load %arg6[%c22, %c0_286, %c0_287] : memref<25x16x32xbf16, #tpu.memory_space<vmem>>, vector<1x16x32xbf16>
    %471 = vector.shape_cast %470 : vector<1x16x32xbf16> to vector<16x32xbf16>
    %cst_288 = arith.constant dense<0.000000e+00> : vector<1x32xf32>
    %472 = tpu.matmul %469, %471, %cst_288 {dimension_numbers = #tpu.dot_dimension_numbers<[1], [0], [0], [1], [0, 0, 1, 1], [], []>} : vector<1x16xbf16>, vector<16x32xbf16>, vector<1x32xf32> -> vector<1x32xf32>
    %473 = arith.addf %467, %472 : vector<1x32xf32>
    %474 = vector.extract_strided_slice %334 {offsets = [3, 0], sizes = [1, 16], strides = [1, 1]} : vector<5x16xf32> to vector<1x16xf32>
    %475 = arith.truncf %474 : vector<1x16xf32> to vector<1x16xbf16>
    %c23 = arith.constant 23 : index
    %c0_289 = arith.constant 0 : index
    %c0_290 = arith.constant 0 : index
    %476 = vector.load %arg6[%c23, %c0_289, %c0_290] : memref<25x16x32xbf16, #tpu.memory_space<vmem>>, vector<1x16x32xbf16>
    %477 = vector.shape_cast %476 : vector<1x16x32xbf16> to vector<16x32xbf16>
    %cst_291 = arith.constant dense<0.000000e+00> : vector<1x32xf32>
    %478 = tpu.matmul %475, %477, %cst_291 {dimension_numbers = #tpu.dot_dimension_numbers<[1], [0], [0], [1], [0, 0, 1, 1], [], []>} : vector<1x16xbf16>, vector<16x32xbf16>, vector<1x32xf32> -> vector<1x32xf32>
    %479 = arith.addf %473, %478 : vector<1x32xf32>
    %480 = vector.extract_strided_slice %334 {offsets = [4, 0], sizes = [1, 16], strides = [1, 1]} : vector<5x16xf32> to vector<1x16xf32>
    %481 = arith.truncf %480 : vector<1x16xf32> to vector<1x16xbf16>
    %c24 = arith.constant 24 : index
    %c0_292 = arith.constant 0 : index
    %c0_293 = arith.constant 0 : index
    %482 = vector.load %arg6[%c24, %c0_292, %c0_293] : memref<25x16x32xbf16, #tpu.memory_space<vmem>>, vector<1x16x32xbf16>
    %483 = vector.shape_cast %482 : vector<1x16x32xbf16> to vector<16x32xbf16>
    %cst_294 = arith.constant dense<0.000000e+00> : vector<1x32xf32>
    %484 = tpu.matmul %481, %483, %cst_294 {dimension_numbers = #tpu.dot_dimension_numbers<[1], [0], [0], [1], [0, 0, 1, 1], [], []>} : vector<1x16xbf16>, vector<16x32xbf16>, vector<1x32xf32> -> vector<1x32xf32>
    %485 = arith.addf %479, %484 : vector<1x32xf32>
    %486 = math.tanh %485 : vector<1x32xf32>
    %487 = arith.truncf %486 : vector<1x32xf32> to vector<1x32xbf16>
    %c0_295 = arith.constant 0 : index
    %c0_296 = arith.constant 0 : index
    %488 = vector.load %arg7[%c0_295, %c0_296] : memref<32x10xbf16, #tpu.memory_space<vmem>>, vector<32x10xbf16>
    %cst_297 = arith.constant dense<0.000000e+00> : vector<1x10xf32>
    %489 = tpu.matmul %487, %488, %cst_297 {dimension_numbers = #tpu.dot_dimension_numbers<[1], [0], [0], [1], [0, 0, 1, 1], [], []>} : vector<1x32xbf16>, vector<32x10xbf16>, vector<1x10xf32> -> vector<1x10xf32>
    %c0_298 = arith.constant 0 : index
    %c0_299 = arith.constant 0 : index
    %490 = vector.load %arg9[%c0_298, %c0_299] : memref<1x10xf32, #tpu.memory_space<vmem>>, vector<1x10xf32>
    %491 = arith.addf %489, %490 : vector<1x10xf32>
    %c0_300 = arith.constant 0 : index
    %c0_301 = arith.constant 0 : index
    %c0_302 = arith.constant 0 : index
    %492 = vector.load %arg10[%c0_300, %c0_301, %c0_302] : memref<1x1x10xf32, #tpu.memory_space<vmem>>, vector<1x1x10xf32>
    %493 = vector.shape_cast %492 : vector<1x1x10xf32> to vector<1x10xf32>
    %494 = vector.shape_cast %491 : vector<1x10xf32> to vector<1x1x10xf32>
    tpu.vector_store %arg10[%c0_300, %c0_301, %c0_302], %494 {strides = array<i32>} : memref<1x1x10xf32, #tpu.memory_space<vmem>>, vector<1x1x10xf32>,
    return
  }
  func.func @transform_0(%arg0: i32) -> (i32, i32, i32) {
    %c0_i32 = arith.constant 0 : i32
    %c0_i32_0 = arith.constant 0 : i32
    %c0_i32_1 = arith.constant 0 : i32
    return %arg0, %c0_i32, %c0_i32_0 : i32, i32, i32
  }
  func.func @transform_1(%arg0: i32) -> (i32, i32) {
    %c0_i32 = arith.constant 0 : i32
    %c0_i32_0 = arith.constant 0 : i32
    %c0_i32_1 = arith.constant 0 : i32
    return %c0_i32, %c0_i32_0 : i32, i32
  }
  func.func @transform_2(%arg0: i32) -> (i32, i32, i32) {
    %c0_i32 = arith.constant 0 : i32
    %c0_i32_0 = arith.constant 0 : i32
    %c0_i32_1 = arith.constant 0 : i32
    %c0_i32_2 = arith.constant 0 : i32
    return %c0_i32, %c0_i32_0, %c0_i32_1 : i32, i32, i32
  }
  func.func @transform_3(%arg0: i32) -> (i32, i32) {
    %c0_i32 = arith.constant 0 : i32
    %c0_i32_0 = arith.constant 0 : i32
    %c0_i32_1 = arith.constant 0 : i32
    return %c0_i32, %c0_i32_0 : i32, i32
  }
  func.func @transform_4(%arg0: i32) -> (i32, i32) {
    %c0_i32 = arith.constant 0 : i32
    %c0_i32_0 = arith.constant 0 : i32
    %c0_i32_1 = arith.constant 0 : i32
    return %c0_i32, %c0_i32_0 : i32, i32
  }
  func.func @transform_5(%arg0: i32) -> (i32, i32, i32) {
    %c0_i32 = arith.constant 0 : i32
    %c0_i32_0 = arith.constant 0 : i32
    %c0_i32_1 = arith.constant 0 : i32
    %c0_i32_2 = arith.constant 0 : i32
    return %c0_i32, %c0_i32_0, %c0_i32_1 : i32, i32, i32
  }
  func.func @transform_6(%arg0: i32) -> (i32, i32) {
    %c0_i32 = arith.constant 0 : i32
    %c0_i32_0 = arith.constant 0 : i32
    %c0_i32_1 = arith.constant 0 : i32
    return %c0_i32, %c0_i32_0 : i32, i32
  }
  func.func @transform_7(%arg0: i32) -> (i32, i32) {
    %c0_i32 = arith.constant 0 : i32
    %c0_i32_0 = arith.constant 0 : i32
    %c0_i32_1 = arith.constant 0 : i32
    return %c0_i32, %c0_i32_0 : i32, i32
  }
  func.func @transform_8(%arg0: i32) -> (i32, i32) {
    %c0_i32 = arith.constant 0 : i32
    %c0_i32_0 = arith.constant 0 : i32
    %c0_i32_1 = arith.constant 0 : i32
    return %c0_i32, %c0_i32_0 : i32, i32
  }
  func.func @transform_9(%arg0: i32) -> (i32, i32, i32) {
    %c0_i32 = arith.constant 0 : i32
    %c0_i32_0 = arith.constant 0 : i32
    %c0_i32_1 = arith.constant 0 : i32
    return %arg0, %c0_i32, %c0_i32_0 : i32, i32, i32
  }
}

</mosaic_0001>

<bundles_post_ra>
// kernel: cnn2d_forward.1
= control target key start
LH: loop header
LB: loop body
LE: loop exit
PB: predicated region body
PF: predicated region fallthrough
CT: control target
= control target key end

     0   :  { %14 = vsyncpa [#allocation3], 0  ;;  %s6173_s0 = inlined_call_operand.vmem [shape: bf16[14,7,36], index: 0, kind: input, shape index: {}]   ;;  %s6174_s1 = inlined_call_operand.vmem [shape: bf16[36,8], index: 1, kind: input, shape index: {}]   ;;  %s6175_s2 = inlined_call_operand.vmem [shape: bf16[9,8,16], index: 2, kind: input, shape index: {}]   ;;  %s6176_s3 = inlined_call_operand.vmem [shape: f32[1,8], index: 3, kind: input, shape index: {}]   ;;  %s6177_s4 = inlined_call_operand.vmem [shape: f32[1,16], index: 4, kind: input, shape index: {}]   ;;  %s6178_s5 = inlined_call_operand.vmem [shape: bf16[25,16,32], index: 5, kind: input, shape index: {}]   ;;  %s6179_s6 = inlined_call_operand.vmem [shape: bf16[32,10], index: 6, kind: input, shape index: {}]   ;;  %s6180_s7 = inlined_call_operand.vmem [shape: f32[1,32], index: 7, kind: input, shape index: {}]   ;;  %s6181_s8 = inlined_call_operand.vmem [shape: f32[1,10], index: 8, kind: input, shape index: {}]   ;;  %s6182_s9 = inlined_call_operand.hbm [shape: f32[2,1,10], index: 9, kind: output, shape index: {}]  }
   0x1   :  { %16 = vsyncpa [#allocation3 + $0x1], 0  ;;  %s5364_s30 = smov 0   ;;  %s5366_s10 = smov 0  }
   0x2   :  { %s5368_s11 = smov 0   ;;  %s5370_s12 = smov 0  }
   0x3 LB: > { %s5385_s13 = sadd.s32 4294967295, %s5309_s12   ;;  %s4204_s14 = sadd.s32 4294967294, %s5309_s12   ;;  %s5309_s12 = sphi %s5370_s12, %s6188_s12   ;;  %s5305_s11 = sphi %s5368_s11, %s6187_s11   ;;  %s5301_s10 = sphi %s5366_s10, %s6186_s10   ;;  %s5297_s30 = sphi %s5364_s30, %s6185_s30  }
   0x4   : > { %s5389_s15 = sadd.s32 1, %s5309_s12   ;;  %s223_s16 = sadd.s32 1, %s5305_s11 }
   0x5   : > { %s220_s17 = ssub.s32 %s5309_s12, %s5389_s15  ;;  %p233_p0 = scmp.ne.s32.totalorder %s5305_s11, %s5301_s10 }
   0x6   : > { %p221_p1 = scmp.eq.s32.totalorder %s220_s17, 0  ;;  %p234_p2 = scmp.eq.s32.totalorder %s5385_s13, 1 }
   0x7   : > { %p239_p3 = scmp.ne.s32.totalorder %s5301_s10, %s5297_s30  ;;  %p240_p4 = scmp.eq.s32.totalorder %s4204_s14, 1 }
   0x8   : > { %s5400_s18 = scalar_select %p221_p1, %s5305_s11, %s223_s16  }
   0x9   : > { %p5402_p5 = por %p234_p2, %p233_p0  ;;  %p5406_p6 = por %p240_p4, %p239_p3 }
   0xa   : > { %p4207_p7 = scmp.ge.s32.totalorder %s5309_s12, 1  ;;  %p291_p8 = scmp.lt.s32.totalorder %s5309_s12, 3 }
   0xc   : > { %p292_p9 = pnand %p4207_p7, %p291_p8 }
   0xd   : > { %v5415_v0 = vld [vmem:[%s6174_s1] sm:$0xff] (!%p292_p9)   ;;  %v5311_v1 = vmov (!%p292_p9), 0.0   ;;  %v5423_v2 = vld [vmem:[%s6174_s1 + $0x8] sm:$0xff] (!%p292_p9)   ;;  %v5193_v3 = vld [vmem:[%s6174_s1 + $0x10] ss:$0 sps:$4 sm:$0x33] (!%p292_p9)  }
   0xe   : > { %295 = sbr.rel (%p292_p9) target bundleno = 1295 (0x50f), region = 56  ;;  %4555 = vmatprep.subr.bf16.mxu0 (!%p292_p9), %v5311_v1  ;;  %4703 = vmatprep.subr.bf16.mxu1 (!%p292_p9), %v5311_v1  ;;  %vm5312_vm0 = vmmov (!%p292_p9), 0   ;;  %vm365_vm1 = vcmask (!%p292_p9), 1041408   ;;  %vm361_vm2 = vcmask (!%p292_p9), 293888   ;;  %v4226_v12 = vld [vmem:[%s6175_s2 + $0x4] sm:$0xf] (!%p292_p9) }
   0xf   : > { %4556 = vmatpush3.bf16.msra.mxu0 (!%p292_p9), %v5415_v0  ;;  %4561 = vmatprep.mubr.msk.bf16.mxu0 (!%p292_p9), %vm5312_vm0, %v5311_v1  ;;  %s326_s27 = smul.u32 (!%p292_p9), 7, %s5385_s13  ;;  %v367_v4 = vsel (!%p292_p9), %vm365_vm1, %v5193_v3, 0  ;;  %vm702_vm3 = vcmask (!%p292_p9), 1043456   ;;  %v4233_v14 = vld [vmem:[%s6175_s2 + $0x10] sm:$0xf] (!%p292_p9)  ;;  %vm698_vm4 = vcmask (!%p292_p9), 64512  }
  0x10   : > { %4557 = vmatprep.subr.bf16.mxu0 (!%p292_p9), %v5311_v1  ;;  %4705 = vmatprep.mubr.msk.bf16.mxu1 (!%p292_p9), %vm5312_vm0, %v5311_v1  ;;  %v5504_v13 = vsel (!%p292_p9), %vm702_vm3, %v4226_v12, 0  ;;  %v5512_v15 = vsel (!%p292_p9), %vm702_vm3, %v4233_v14, 0  ;;  %v5519_v16 = vld [vmem:[%s6176_s3] ss:$0 sm:$0xff] (!%p292_p9)  ;;  %v4229_v37 = vld [vmem:[%s6175_s2 + $0x8] sm:$0xf] (!%p292_p9) }
  0x11   : > { %p327_p10 = scmp.lt.s32.totalorder (!%p292_p9), %s326_s27, 13  ;;  %4704 = vmatpush3.bf16.msra.mxu1 (!%p292_p9), %v5512_v15  ;;  %v688_v29 = vld [vmem:[%s6175_s2] sm:$0xf] (!%p292_p9)  ;;  %v5539_v41 = vsel (!%p292_p9), %vm702_vm3, %v4229_v37, 0  ;;  %v4231_v42 = vld [vmem:[%s6175_s2 + $0xc] sm:$0xf] (!%p292_p9) }
  0x12   : > { %4715 = vmatprep.subr.bf16.mxu1 (!%p292_p9), %v5311_v1  ;;  %v5526_v33 = vsel (!%p292_p9), %vm702_vm3, %v688_v29, 0  ;;  %v5550_v46 = vsel (!%p292_p9), %vm702_vm3, %v4231_v42, 0  ;;  %v4237_v56 = vld [vmem:[%s6175_s2 + $0x18] sm:$0xf] (!%p292_p9)  ;;  %v4241_v3 = vld [vmem:[%s6175_s2 + $0x20] sm:$0xf] (!%p292_p9) }
  0x13   : > { %4558 = vmatpush3.bf16.msra.mxu0 (!%p292_p9), %v5423_v2  ;;  %v5570_v59 = vsel (!%p292_p9), %vm702_vm3, %v4237_v56, 0  ;;  %vm2720_vm5 = vcmask (!%p292_p9), 130048   ;;  %vm4090_vm6 = vcmask (!%p292_p9), 261120   ;;  %s324_s26 = sand.u32 (!%p292_p9), 1, %s5301_s10   ;;  %s4381_s29 = sshll.u32 (!%p292_p9), %s5385_s13, 4  ;;  %vm4134_vm7 = vcmask (!%p292_p9), 73728  }
  0x14   : > { %4559 = vmatprep.subr.bf16.mxu0 (!%p292_p9), %v5311_v1  ;;  %s325_s14 = scalar_lea.vmem (!%p292_p9), [#allocation2], %s324_s26  ;;  %s6131_s22 = scalar_lea.hbm (!%p292_p9), %s6182_s9, %s4381_s29 }
  0x15   : > { %s6190_s27 = smov (!%p327_p10, %s326_s27), 13  ;;  %s4137_s13 = scalar_lea.sflag [#allocation3], %s324_s26 }
  0x16   : > { %s4208_s28 = sshll.u32 %s6190_s27, 2  ;;  %s5313_s24 = smov [#allocation2]  }
  0x17   : > { %4560 = vmatpush3.bf16.msra.mxu0 %v367_v4  ;;  %s5439_s16 = scalar_lea.vmem %s6173_s0, %s4208_s28  ;;  %s5251_s25 = sshll.u32 %s5313_s24, 4  ;;  %s5252_s25 = int_to_ptr.vmem [resolvable:$false] %s5251_s25 }
  0x18   : > { %v339_v5 = vld [vmem:[%s5439_s16] sm:$0xf]  ;;  %4565 = vmatprep.subr.bf16.mxu0 %v5311_v1  ;;  %v4214_v6 = vld [vmem:[%s5439_s16 + $0x4] sm:$0xf]  ;;  %v4216_v7 = vld [vmem:[%s5439_s16 + $0x8] sm:$0xf] }
  0x19   : > { %v4218_v8 = vld [vmem:[%s5439_s16 + $0xc] sm:$0xf]  ;;  %v4220_v9 = vld [vmem:[%s5439_s16 + $0x10] sm:$0xf]  ;;  %v4222_v10 = vld [vmem:[%s5439_s16 + $0x14] sm:$0xf] }
  0x1a   : > { %4562 = vmatmul.mubr.msk.bf16.vlgmr.msra.gmra.mrb[0].mxu0 %vm361_vm2, %v339_v5  ;;  %v4224_v11 = vld [vmem:[%s5439_s16 + $0x18] sm:$0xf]  ;;  %s4149_s16 = sshll.u32 %s325_s14, 4  ;;  %s5253_s27 = scalar_lea.vmem %s5252_s25, 32  ;;  %s6133_s16 = int_to_ptr.vmem [resolvable:$true] %s4149_s16 }
  0x1b   : > { %4566 = vmatpush3.bf16.msra.mxu0 %v5415_v0  ;;  %4571 = vmatprep.mubr.msk.bf16.mxu0 %vm5312_vm0, %v5311_v1  ;;  %s5247_s23 = scalar_lea.vmem %s6133_s16, 16  ;;  %p5254_p0 = scmp.lt.s32.totalorder %s6133_s16, %s5252_s25 }
  0x1c   : > { %4567 = vmatprep.subr.bf16.mxu0 %v5311_v1  ;;  %p5248_p11 = scmp.ne.s32.totalorder %s6133_s16, %s5247_s23  ;;  %p5255_p1 = scmp.lt.s32.totalorder %s5253_s27, %s5247_s23 }
  0x1e   : > { %p5249_p12 = pnand %p5248_p11, %p5402_p5  ;;  %p5256_p2 = por %p5255_p1, %p5254_p0 }
  0x1f   : > { %4568 = vmatpush3.bf16.msra.mxu0 %v5423_v2 }
  0x20   : > { %4569 = vmatprep.subr.bf16.mxu0 %v5311_v1  ;;  %p5250_p13 = pneg %p5249_p12 }
  0x22   : > { %p5257_p3 = pnand %p5256_p2, %p5250_p13 }
  0x23   : > { %4570 = vmatpush3.bf16.msra.mxu0 %v367_v4 }
  0x24   : > { %4575 = vmatprep.subr.bf16.mxu0 %v5311_v1 }
  0x26   : > { %4572 = vmatmul.mubr.msk.bf16.vlgmr.msra.gmra.mrb[4].mxu0 %vm361_vm2, %v4214_v6 }
  0x27   : > { %4576 = vmatpush3.bf16.msra.mxu0 %v5415_v0  ;;  %4581 = vmatprep.mubr.msk.bf16.mxu0 %vm5312_vm0, %v5311_v1 }
  0x28   : > { %4577 = vmatprep.subr.bf16.mxu0 %v5311_v1 }
  0x2b   : > { %4578 = vmatpush3.bf16.msra.mxu0 %v5423_v2 }
  0x2c   : > { %4579 = vmatprep.subr.bf16.mxu0 %v5311_v1 }
  0x2f   : > { %4580 = vmatpush3.bf16.msra.mxu0 %v367_v4 }
  0x30   : > { %4585 = vmatprep.subr.bf16.mxu0 %v5311_v1 }
  0x32   : > { %4582 = vmatmul.mubr.msk.bf16.vlgmr.msra.gmra.mrb[8].mxu0 %vm361_vm2, %v4216_v7 }
  0x33   : > { %4586 = vmatpush3.bf16.msra.mxu0 %v5415_v0  ;;  %4591 = vmatprep.mubr.msk.bf16.mxu0 %vm5312_vm0, %v5311_v1 }
  0x34   : > { %4587 = vmatprep.subr.bf16.mxu0 %v5311_v1 }
  0x37   : > { %4588 = vmatpush3.bf16.msra.mxu0 %v5423_v2 }
  0x38   : > { %4589 = vmatprep.subr.bf16.mxu0 %v5311_v1 }
  0x3b   : > { %4590 = vmatpush3.bf16.msra.mxu0 %v367_v4 }
  0x3c   : > { %4595 = vmatprep.subr.bf16.mxu0 %v5311_v1 }
  0x3e   : > { %4592 = vmatmul.mubr.msk.bf16.vlgmr.msra.gmra.mrb[12].mxu0 %vm361_vm2, %v4218_v8 }
  0x3f   : > { %4596 = vmatpush3.bf16.msra.mxu0 %v5415_v0  ;;  %4601 = vmatprep.mubr.msk.bf16.mxu0 %vm5312_vm0, %v5311_v1 }
  0x40   : > { %4597 = vmatprep.subr.bf16.mxu0 %v5311_v1 }
  0x43   : > { %4598 = vmatpush3.bf16.msra.mxu0 %v5423_v2 }
  0x44   : > { %4599 = vmatprep.subr.bf16.mxu0 %v5311_v1 }
  0x47   : > { %4600 = vmatpush3.bf16.msra.mxu0 %v367_v4 }
  0x48   : > { %4605 = vmatprep.subr.bf16.mxu0 %v5311_v1 }
  0x4a   : > { %4602 = vmatmul.mubr.msk.bf16.vlgmr.msra.gmra.mrb[16].mxu0 %vm361_vm2, %v4220_v9 }
  0x4b   : > { %4606 = vmatpush3.bf16.msra.mxu0 %v5415_v0  ;;  %4611 = vmatprep.mubr.msk.bf16.mxu0 %vm5312_vm0, %v5311_v1 }
  0x4c   : > { %4607 = vmatprep.subr.bf16.mxu0 %v5311_v1 }
  0x4f   : > { %4608 = vmatpush3.bf16.msra.mxu0 %v5423_v2 }
  0x50   : > { %4609 = vmatprep.subr.bf16.mxu0 %v5311_v1 }
  0x53   : > { %4610 = vmatpush3.bf16.msra.mxu0 %v367_v4 }
  0x54   : > { %4615 = vmatprep.subr.bf16.mxu0 %v5311_v1 }
  0x56   : > { %4612 = vmatmul.mubr.msk.bf16.vlgmr.msra.gmra.mrb[20].mxu0 %vm361_vm2, %v4222_v10  ;;  %v5600_v10 = vsel %vm702_vm3, %v4241_v3, 0 }
  0x57   : > { %4616 = vmatpush3.bf16.msra.mxu0 %v5415_v0  ;;  %4621 = vmatprep.mubr.msk.bf16.mxu0 %vm5312_vm0, %v5311_v1 }
  0x58   : > { %4617 = vmatprep.subr.bf16.mxu0 %v5311_v1 }
  0x5b   : > { %4618 = vmatpush3.bf16.msra.mxu0 %v5423_v2  ;;  %v4235_v2 = vld [vmem:[%s6175_s2 + $0x14] sm:$0xf] }
  0x5c   : > { %4619 = vmatprep.subr.bf16.mxu0 %v5311_v1  ;;  %v5597_v9 = vsel %vm702_vm3, %v4235_v2, 0 }
  0x5f   : > { %4620 = vmatpush3.bf16.msra.mxu0 %v367_v4 }
  0x60   : > { %4625 = vmatprep.subr.bf16.mxu0 %v5311_v1 }
  0x62   : > { %4622 = vmatmul.mubr.msk.bf16.vlgmr.msra.gmra.mrb[24].mxu0 %vm361_vm2, %v4224_v11 }
  0x63   : > { %4627 = vmatprep.mubr.msk.bf16.mxu0 %vm5312_vm0, %v5311_v1  ;;  %4626 = vmatpush3.bf16.msra.mxu0 %v5504_v13 }
  0x64   : > { %4631 = vmatprep.subr.bf16.mxu0 %v5311_v1 }
  0xed   : > { %v403_v17 = vpop.f32.mrb[0].mxu0 }
  0xee   : > { %v404_v18 = vadd.f32 %v5519_v16, %v403_v17  ;;  %v4563_v19 = vpop.f32.mrb[1].mxu0 }
  0xef   : > { %v406_v20 = vpop.f32.mrb[2].mxu0 }
  0xf0   : > { %5221 = vtanh.f32 %v404_v18  ;;  %v4564_v21 = vpop.f32.mrb[3].mxu0 }
  0xf1   : > { %v4239_v21 = vld [vmem:[%s6175_s2 + $0x1c] sm:$0xf] }
  0xf9   : > { %v449_v22 = vpop.f32.mrb[4].mxu0 }
  0xfa   : > { %v5222_v23 = vpop.eup %5221  ;;  %v4573_v24 = vpop.f32.mrb[5].mxu0  ;;  %v450_v34 = vadd.f32 %v5519_v16, %v449_v22  ;;  %v5638_v22 = vsel %vm702_vm3, %v4239_v21, 0 }
  0xfb   : > { %v687_v25 = vpack.c.bf16 %v5222_v23, %v5222_v23  ;;  %v452_v26 = vpop.f32.mrb[6].mxu0 }
  0xfc   : > { %v4574_v27 = vpop.f32.mrb[7].mxu0  ;;  %5223 = vtanh.f32 %v450_v34 }
  0xfd   : > { %v694_v28 = vshll.u32 %v687_v25, 16  ;;  %v692_v30 = vshrl.u32 %v687_v25, 16  ;;  %v794_v44 = vrot.slane %v687_v25, 1 }
  0xff   : > { %v696_v31 = vrot.slane %v694_v28, 1 }
 0x101   : > { %v697_v32 = vor.u32 %v696_v31, %v692_v30 }
 0x103   : > { %4628 = vmatmul.mubr.msk.bf16.vlgmr.msra.gmra.mrb[28].mxu0 %vm698_vm4, %v697_v32 }
 0x104   : > { %4632 = vmatpush3.bf16.msra.mxu0 %v5526_v33  ;;  %4633 = vmatprep.mubr.msk.bf16.mxu0 %vm5312_vm0, %v5311_v1 }
 0x105   : > { %v495_v35 = vpop.f32.mrb[8].mxu0  ;;  %4637 = vmatprep.subr.bf16.mxu0 %v5311_v1 }
 0x106   : > { %v496_v36 = vadd.f32 %v5519_v16, %v495_v35  ;;  %v4583_v38 = vpop.f32.mrb[9].mxu0  ;;  %v5224_v43 = vpop.eup %5223 }
 0x107   : > { %v498_v39 = vpop.f32.mrb[10].mxu0  ;;  %v5559_v53 = vpack.c.bf16 %v5224_v43, %v5224_v43 }
 0x108   : > { %5225 = vtanh.f32 %v496_v36  ;;  %v4584_v40 = vpop.f32.mrb[11].mxu0 }
 0x109   : > { %v896_v60 = vshll.u32 %v5559_v53, 16  ;;  %v894_v61 = vshrl.u32 %v5559_v53, 16  ;;  %v950_v12 = vrot.slane %v5559_v53, 1 }
 0x10b   : > { %4634 = vmatmul.mubr.msk.bf16.vlgmr.msra.gmra.mrb[32].mxu0 %vm698_vm4, %v687_v25  ;;  %v898_v62 = vrot.slane %v896_v60, 1 }
 0x10c   : > { %4638 = vmatpush3.bf16.msra.mxu0 %v5539_v41  ;;  %4639 = vmatprep.mubr.msk.bf16.mxu0 %vm5312_vm0, %v5311_v1 }
 0x10d   : > { %4643 = vmatprep.subr.bf16.mxu0 %v5311_v1  ;;  %v5594_v8 = vor.u32 %v898_v62, %v894_v61 }
 0x111   : > { %v541_v45 = vpop.f32.mrb[12].mxu0 }
 0x112   : > { %v5226_v47 = vpop.eup %5225  ;;  %v542_v48 = vadd.f32 %v5519_v16, %v541_v45  ;;  %v4593_v49 = vpop.f32.mrb[13].mxu0 }
 0x113   : > { %v5553_v50 = vpack.c.bf16 %v5226_v47, %v5226_v47  ;;  %4640 = vmatmul.mubr.msk.bf16.vlgmr.msra.gmra.mrb[36].mxu0 %vm698_vm4, %v794_v44  ;;  %v544_v51 = vpop.f32.mrb[14].mxu0 }
 0x114   : > { %5227 = vtanh.f32 %v542_v48  ;;  %4644 = vmatpush3.bf16.msra.mxu0 %v5550_v46  ;;  %4645 = vmatprep.mubr.msk.bf16.mxu0 %vm5312_vm0, %v5311_v1  ;;  %v4594_v52 = vpop.f32.mrb[15].mxu0 }
 0x115   : > { %4649 = vmatprep.subr.bf16.mxu0 %v5311_v1  ;;  %v1050_v54 = vshrl.u32 %v5553_v50, 16  ;;  %v1052_v55 = vshll.u32 %v5553_v50, 16  ;;  %v5668_v26 = vrot.slane %v5553_v50, 1  ;;  %v5194_v52 = vld [vmem:[%s6178_s5] sm:$0xff]  }
 0x117   : > { %v1054_v57 = vrot.slane %v1052_v55, 1 }
 0x119   : > { %v5567_v58 = vor.u32 %v1054_v57, %v1050_v54 }
 0x11b   : > { %4646 = vmatmul.mubr.msk.bf16.vlgmr.msra.gmra.mrb[40].mxu0 %vm698_vm4, %v5559_v53  ;;  %4706 = vmatmul.mubr.msk.bf16.vlgmr.msra.gmra.mrb[0].mxu1 %vm698_vm4, %v5567_v58 }
 0x11c   : > { %4650 = vmatpush3.bf16.msra.mxu0 %v5512_v15  ;;  %4716 = vmatpush3.bf16.msra.mxu1 %v5570_v59 }
 0x11d   : > { %4651 = vmatprep.mubr.msk.bf16.mxu0 %vm5312_vm0, %v5311_v1  ;;  %4655 = vmatprep.subr.bf16.mxu0 %v5311_v1  ;;  %v587_v63 = vpop.f32.mrb[16].mxu0 }
 0x11e   : > { %v5228_v0 = vpop.eup %5227  ;;  %4717 = vmatprep.mubr.msk.bf16.mxu1 %vm5312_vm0, %v5311_v1  ;;  %4727 = vmatprep.subr.bf16.mxu1 %v5311_v1  ;;  %v4603_v4 = vpop.f32.mrb[17].mxu0  ;;  %v588_v17 = vadd.f32 %v5519_v16, %v587_v63 }
 0x11f   : > { %v5592_v5 = vpack.c.bf16 %v5228_v0, %v5228_v0  ;;  %v590_v6 = vpop.f32.mrb[18].mxu0 }
 0x120   : > { %v4604_v7 = vpop.f32.mrb[19].mxu0  ;;  %5229 = vtanh.f32 %v588_v17 }
 0x121   : > { %v5615_v11 = vrot.slane %v5592_v5, 1  ;;  %v1453_v30 = vshll.u32 %v5592_v5, 16  ;;  %v1451_v36 = vshrl.u32 %v5592_v5, 16 }
 0x123   : > { %4652 = vmatmul.mubr.msk.bf16.vlgmr.msra.gmra.mrb[44].mxu0 %vm698_vm4, %v5594_v8  ;;  %4718 = vmatmul.mubr.msk.bf16.vlgmr.msra.gmra.mrb[4].mxu1 %vm698_vm4, %v5592_v5  ;;  %v1455_v37 = vrot.slane %v1453_v30, 1 }
 0x124   : > { %4656 = vmatpush3.bf16.msra.mxu0 %v5597_v9  ;;  %4728 = vmatpush3.bf16.msra.mxu1 %v5600_v10 }
 0x125   : > { %4657 = vmatprep.mubr.msk.bf16.mxu0 %vm5312_vm0, %v5311_v1  ;;  %4661 = vmatprep.subr.bf16.mxu0 %v5311_v1  ;;  %v5699_v38 = vor.u32 %v1455_v37, %v1451_v36 }
 0x126   : > { %4729 = vmatprep.mubr.msk.bf16.mxu1 %vm5312_vm0, %v5311_v1  ;;  %4739 = vmatprep.subr.bf16.mxu1 %v5311_v1 }
 0x129   : > { %v5618_v14 = vpop.f32.mrb[20].mxu0 }
 0x12a   : > { %v4613_v18 = vpop.f32.mrb[21].mxu0  ;;  %v5230_v23 = vpop.eup %5229  ;;  %v634_v39 = vadd.f32 %v5519_v16, %v5618_v14 }
 0x12b   : > { %4658 = vmatmul.mubr.msk.bf16.vlgmr.msra.gmra.mrb[48].mxu0 %vm698_vm4, %v950_v12  ;;  %4730 = vmatmul.mubr.msk.bf16.vlgmr.msra.gmra.mrb[8].mxu1 %vm698_vm4, %v5615_v11  ;;  %v636_v19 = vpop.f32.mrb[22].mxu0  ;;  %v5654_v24 = vpack.c.bf16 %v5230_v23, %v5230_v23 }
 0x12c   : > { %4662 = vmatpush3.bf16.msra.mxu0 %v5570_v59  ;;  %4740 = vmatpush3.bf16.msra.mxu1 %v5526_v33  ;;  %v4614_v20 = vpop.f32.mrb[23].mxu0  ;;  %5231 = vtanh.f32 %v634_v39 }
 0x12d   : > { %4663 = vmatprep.mubr.msk.bf16.mxu0 %vm5312_vm0, %v5311_v1  ;;  %4667 = vmatprep.subr.bf16.mxu0 %v5311_v1  ;;  %v1840_v25 = vshll.u32 %v5654_v24, 16  ;;  %v1838_v27 = vshrl.u32 %v5654_v24, 16  ;;  %v1889_v51 = vrot.slane %v5654_v24, 1 }
 0x12e   : > { %4741 = vmatprep.mubr.msk.bf16.mxu1 %vm5312_vm0, %v5311_v1  ;;  %4751 = vmatprep.subr.bf16.mxu1 %v5311_v1 }
 0x12f   : > { %v1842_v28 = vrot.slane %v1840_v25, 1 }
 0x131   : > { %v5683_v29 = vor.u32 %v1842_v28, %v1838_v27 }
 0x133   : > { %4664 = vmatmul.mubr.msk.bf16.vlgmr.msra.gmra.mrb[52].mxu0 %vm698_vm4, %v5553_v50  ;;  %4742 = vmatmul.mubr.msk.bf16.vlgmr.msra.gmra.mrb[12].mxu1 %vm698_vm4, %v5553_v50 }
 0x134   : > { %4668 = vmatpush3.bf16.msra.mxu0 %v5638_v22  ;;  %4669 = vmatprep.mubr.msk.bf16.mxu0 %vm5312_vm0, %v5311_v1 }
 0x135   : > { %4673 = vmatprep.subr.bf16.mxu0 %v5311_v1  ;;  %4752 = vmatpush3.bf16.msra.mxu1 %v5550_v46  ;;  %v679_v31 = vpop.f32.mrb[24].mxu0 }
 0x136   : > { %4753 = vmatprep.mubr.msk.bf16.mxu1 %vm5312_vm0, %v5311_v1  ;;  %4763 = vmatprep.subr.bf16.mxu1 %v5311_v1  ;;  %v4623_v32 = vpop.f32.mrb[25].mxu0  ;;  %v5232_v40 = vpop.eup %5231  ;;  %v680_v44 = vadd.f32 %v5519_v16, %v679_v31 }
 0x137   : > { %v682_v34 = vpop.f32.mrb[26].mxu0  ;;  %v5740_v42 = vpack.c.bf16 %v5232_v40, %v5232_v40 }
 0x138   : > { %v4624_v35 = vpop.f32.mrb[27].mxu0  ;;  %5233 = vtanh.f32 %v680_v44 }
 0x139   : > { %v2276_v43 = vrot.slane %v5740_v42, 1 }
 0x13b   : > { %4670 = vmatmul.mubr.msk.bf16.vlgmr.msra.gmra.mrb[56].mxu0 %vm698_vm4, %v5567_v58  ;;  %4754 = vmatmul.mubr.msk.bf16.vlgmr.msra.gmra.mrb[16].mxu1 %vm698_vm4, %v5592_v5 }
 0x13c   : > { %4674 = vmatpush3.bf16.msra.mxu0 %v5600_v10  ;;  %4675 = vmatprep.mubr.msk.bf16.mxu0 %vm5312_vm0, %v5311_v1 }
 0x13d   : > { %4679 = vmatprep.subr.bf16.mxu0 %v5311_v1  ;;  %4764 = vmatpush3.bf16.msra.mxu1 %v5597_v9 }
 0x13e   : > { %4765 = vmatprep.mubr.msk.bf16.mxu1 %vm5312_vm0, %v5311_v1  ;;  %4775 = vmatprep.subr.bf16.mxu1 %v5311_v1 }
 0x142   : > { %v5234_v16 = vpop.eup %5233 }
 0x143   : > { %4676 = vmatmul.mubr.msk.bf16.vlgmr.msra.gmra.mrb[60].mxu0 %vm698_vm4, %v5668_v26  ;;  %4766 = vmatmul.mubr.msk.bf16.vlgmr.msra.gmra.mrb[20].mxu1 %vm698_vm4, %v5615_v11  ;;  %v5781_v45 = vpack.c.bf16 %v5234_v16, %v5234_v16 }
 0x144   : > { %4680 = vmatpush3.bf16.msra.mxu0 %v5504_v13  ;;  %4681 = vmatprep.mubr.msk.bf16.mxu0 %vm5312_vm0, %v5311_v1 }
 0x145   : > { %4685 = vmatprep.subr.bf16.mxu0 %v5311_v1  ;;  %4776 = vmatpush3.bf16.msra.mxu1 %v5638_v22  ;;  %v2614_v47 = vshll.u32 %v5781_v45, 16  ;;  %v2612_v48 = vshrl.u32 %v5781_v45, 16  ;;  %v2663_v60 = vrot.slane %v5781_v45, 1 }
 0x146   : > { %4777 = vmatprep.mubr.msk.bf16.mxu1 %vm5312_vm0, %v5311_v1  ;;  %4787 = vmatprep.subr.bf16.mxu1 %v5311_v1 }
 0x147   : > { %v2616_v49 = vrot.slane %v2614_v47, 1 }
 0x14b   : > { %4682 = vmatmul.mubr.msk.bf16.vlgmr.msra.gmra.mrb[64].mxu0 %vm698_vm4, %v5594_v8  ;;  %4778 = vmatmul.mubr.msk.bf16.vlgmr.msra.gmra.mrb[24].mxu1 %vm698_vm4, %v5683_v29 }
 0x14c   : > { %4686 = vmatpush3.bf16.msra.mxu0 %v5526_v33  ;;  %4687 = vmatprep.mubr.msk.bf16.mxu0 %vm5312_vm0, %v5311_v1 }
 0x14d   : > { %4691 = vmatprep.subr.bf16.mxu0 %v5311_v1  ;;  %4788 = vmatpush3.bf16.msra.mxu1 %v5504_v13 }
 0x14e   : > { %4789 = vmatprep.mubr.msk.bf16.mxu1 %vm5312_vm0, %v5311_v1  ;;  %4799 = vmatprep.subr.bf16.mxu1 %v5311_v1 }
 0x153   : > { %4688 = vmatmul.mubr.msk.bf16.vlgmr.msra.gmra.mrb[68].mxu0 %vm698_vm4, %v5559_v53  ;;  %4790 = vmatmul.mubr.msk.bf16.vlgmr.msra.gmra.mrb[28].mxu1 %vm698_vm4, %v5699_v38 }
 0x154   : > { %4692 = vmatpush3.bf16.msra.mxu0 %v5539_v41  ;;  %4693 = vmatprep.mubr.msk.bf16.mxu0 %vm5312_vm0, %v5311_v1 }
 0x155   : > { %4697 = vmatprep.subr.bf16.mxu0 %v5311_v1  ;;  %4800 = vmatpush3.bf16.msra.mxu1 %v5539_v41 }
 0x156   : > { %4801 = vmatprep.mubr.msk.bf16.mxu1 %vm5312_vm0, %v5311_v1  ;;  %4811 = vmatprep.subr.bf16.mxu1 %v5311_v1 }
 0x15b   : > { %4694 = vmatmul.mubr.msk.bf16.vlgmr.msra.gmra.mrb[72].mxu0 %vm698_vm4, %v950_v12  ;;  %4802 = vmatmul.mubr.msk.bf16.vlgmr.msra.gmra.mrb[32].mxu1 %vm698_vm4, %v5615_v11 }
 0x15c   : > { %4698 = vmatpush3.bf16.msra.mxu0 %v5550_v46  ;;  %4699 = vmatprep.mubr.msk.bf16.mxu0 %vm5312_vm0, %v5311_v1 }
 0x15d   : > { %4709 = vmatprep.subr.bf16.mxu0 %v5311_v1  ;;  %4812 = vmatpush3.bf16.msra.mxu1 %v5512_v15 }
 0x15e   : > { %4813 = vmatprep.mubr.msk.bf16.mxu1 %vm5312_vm0, %v5311_v1  ;;  %4823 = vmatprep.subr.bf16.mxu1 %v5311_v1 }
 0x163   : > { %4700 = vmatmul.mubr.msk.bf16.vlgmr.msra.gmra.mrb[76].mxu0 %vm698_vm4, %v5553_v50  ;;  %4814 = vmatmul.mubr.msk.bf16.vlgmr.msra.gmra.mrb[36].mxu1 %vm698_vm4, %v5683_v29  ;;  %v2617_v50 = vor.u32 %v2616_v49, %v2612_v48 }
 0x164   : > { %4710 = vmatpush3.bf16.msra.mxu0 %v5597_v9  ;;  %4711 = vmatprep.mubr.msk.bf16.mxu0 %vm5312_vm0, %v5311_v1 }
 0x165   : > { %4721 = vmatprep.subr.bf16.mxu0 %v5311_v1  ;;  %4824 = vmatpush3.bf16.msra.mxu1 %v5570_v59 }
 0x166   : > { %4825 = vmatprep.mubr.msk.bf16.mxu1 %vm5312_vm0, %v5311_v1  ;;  %4835 = vmatprep.subr.bf16.mxu1 %v5311_v1 }
 0x16b   : > { %4712 = vmatmul.mubr.msk.bf16.vlgmr.msra.gmra.mrb[80].mxu0 %vm698_vm4, %v5668_v26  ;;  %4826 = vmatmul.mubr.msk.bf16.vlgmr.msra.gmra.mrb[40].mxu1 %vm698_vm4, %v5740_v42 }
 0x16c   : > { %4722 = vmatpush3.bf16.msra.mxu0 %v5638_v22  ;;  %4723 = vmatprep.mubr.msk.bf16.mxu0 %vm5312_vm0, %v5311_v1 }
 0x16d   : > { %4733 = vmatprep.subr.bf16.mxu0 %v5311_v1  ;;  %4836 = vmatpush3.bf16.msra.mxu1 %v5600_v10 }
 0x16e   : > { %4837 = vmatprep.mubr.msk.bf16.mxu1 %vm5312_vm0, %v5311_v1  ;;  %4847 = vmatprep.subr.bf16.mxu1 %v5311_v1 }
 0x173   : > { %4724 = vmatmul.mubr.msk.bf16.vlgmr.msra.gmra.mrb[84].mxu0 %vm698_vm4, %v5699_v38  ;;  %4838 = vmatmul.mubr.msk.bf16.vlgmr.msra.gmra.mrb[44].mxu1 %vm698_vm4, %v2276_v43 }
 0x174   : > { %4734 = vmatpush3.bf16.msra.mxu0 %v5504_v13  ;;  %4735 = vmatprep.mubr.msk.bf16.mxu0 %vm5312_vm0, %v5311_v1 }
 0x175   : > { %4745 = vmatprep.subr.bf16.mxu0 %v5311_v1  ;;  %4848 = vmatpush3.bf16.msra.mxu1 %v5526_v33 }
 0x176   : > { %4849 = vmatprep.mubr.msk.bf16.mxu1 %vm5312_vm0, %v5311_v1  ;;  %4859 = vmatprep.subr.bf16.mxu1 %v5311_v1 }
 0x17b   : > { %4736 = vmatmul.mubr.msk.bf16.vlgmr.msra.gmra.mrb[88].mxu0 %vm698_vm4, %v5567_v58  ;;  %4850 = vmatmul.mubr.msk.bf16.vlgmr.msra.gmra.mrb[48].mxu1 %vm698_vm4, %v5654_v24 }
 0x17c   : > { %4746 = vmatpush3.bf16.msra.mxu0 %v5539_v41  ;;  %4747 = vmatprep.mubr.msk.bf16.mxu0 %vm5312_vm0, %v5311_v1 }
 0x17d   : > { %4757 = vmatprep.subr.bf16.mxu0 %v5311_v1  ;;  %4860 = vmatpush3.bf16.msra.mxu1 %v5550_v46 }
 0x17e   : > { %4861 = vmatprep.mubr.msk.bf16.mxu1 %vm5312_vm0, %v5311_v1  ;;  %4871 = vmatprep.subr.bf16.mxu1 %v5311_v1 }
 0x183   : > { %4748 = vmatmul.mubr.msk.bf16.vlgmr.msra.gmra.mrb[92].mxu0 %vm698_vm4, %v5668_v26  ;;  %4862 = vmatmul.mubr.msk.bf16.vlgmr.msra.gmra.mrb[52].mxu1 %vm698_vm4, %v5740_v42 }
 0x184   : > { %4758 = vmatpush3.bf16.msra.mxu0 %v5512_v15  ;;  %4759 = vmatprep.mubr.msk.bf16.mxu0 %vm5312_vm0, %v5311_v1 }
 0x185   : > { %4769 = vmatprep.subr.bf16.mxu0 %v5311_v1  ;;  %4872 = vmatpush3.bf16.msra.mxu1 %v5597_v9 }
 0x186   : > { %4873 = vmatprep.mubr.msk.bf16.mxu1 %vm5312_vm0, %v5311_v1  ;;  %4883 = vmatprep.subr.bf16.mxu1 %v5311_v1 }
 0x18b   : > { %4760 = vmatmul.mubr.msk.bf16.vlgmr.msra.gmra.mrb[96].mxu0 %vm698_vm4, %v5699_v38  ;;  %4874 = vmatmul.mubr.msk.bf16.vlgmr.msra.gmra.mrb[56].mxu1 %vm698_vm4, %v2276_v43 }
 0x18c   : > { %4770 = vmatpush3.bf16.msra.mxu0 %v5570_v59  ;;  %4771 = vmatprep.mubr.msk.bf16.mxu0 %vm5312_vm0, %v5311_v1 }
 0x18d   : > { %4781 = vmatprep.subr.bf16.mxu0 %v5311_v1  ;;  %4884 = vmatpush3.bf16.msra.mxu1 %v5638_v22 }
 0x18e   : > { %4885 = vmatprep.mubr.msk.bf16.mxu1 %vm5312_vm0, %v5311_v1  ;;  %4895 = vmatprep.subr.bf16.mxu1 %v5311_v1 }
 0x193   : > { %4772 = vmatmul.mubr.msk.bf16.vlgmr.msra.gmra.mrb[100].mxu0 %vm698_vm4, %v5654_v24  ;;  %4886 = vmatmul.mubr.msk.bf16.vlgmr.msra.gmra.mrb[60].mxu1 %vm698_vm4, %v2617_v50 }
 0x194   : > { %4782 = vmatpush3.bf16.msra.mxu0 %v5600_v10  ;;  %4783 = vmatprep.mubr.msk.bf16.mxu0 %vm5312_vm0, %v5311_v1 }
 0x195   : > { %4793 = vmatprep.subr.bf16.mxu0 %v5311_v1  ;;  %4897 = vmatprep.mubr.msk.bf16.mxu1 %vm5312_vm0, %v5311_v1 }
 0x196   : > { %4896 = vmatpush3.bf16.msra.mxu1 %v5194_v52 }
 0x197   : > { %4901 = vmatprep.subr.bf16.mxu1 %v5311_v1 }
 0x19b   : > { %4784 = vmatmul.mubr.msk.bf16.vlgmr.msra.gmra.mrb[104].mxu0 %vm698_vm4, %v1889_v51 }
 0x19c   : > { %4794 = vmatpush3.bf16.msra.mxu0 %v5526_v33  ;;  %4795 = vmatprep.mubr.msk.bf16.mxu0 %vm5312_vm0, %v5311_v1  ;;  %v2227_v33 = vshll.u32 %v5740_v42, 16 }
 0x19d   : > { %4805 = vmatprep.subr.bf16.mxu0 %v5311_v1 }
 0x19e   : > { %v2229_v53 = vrot.slane %v2227_v33, 1 }
 0x1a3   : > { %4796 = vmatmul.mubr.msk.bf16.vlgmr.msra.gmra.mrb[108].mxu0 %vm698_vm4, %v5592_v5 }
 0x1a4   : > { %4806 = vmatpush3.bf16.msra.mxu0 %v5550_v46  ;;  %4807 = vmatprep.mubr.msk.bf16.mxu0 %vm5312_vm0, %v5311_v1  ;;  %v2225_v46 = vshrl.u32 %v5740_v42, 16 }
 0x1a5   : > { %4817 = vmatprep.subr.bf16.mxu0 %v5311_v1 }
 0x1a6   : > { %v2230_v54 = vor.u32 %v2229_v53, %v2225_v46  ;;  %v5888_v46 = vld [vmem:[%s6177_s4] ss:$0 sm:$0xff] }
 0x1ab   : > { %4808 = vmatmul.mubr.msk.bf16.vlgmr.msra.gmra.mrb[112].mxu0 %vm698_vm4, %v5654_v24 }
 0x1ac   : > { %4818 = vmatpush3.bf16.msra.mxu0 %v5597_v9  ;;  %4819 = vmatprep.mubr.msk.bf16.mxu0 %vm5312_vm0, %v5311_v1 }
 0x1ad   : > { %4829 = vmatprep.subr.bf16.mxu0 %v5311_v1 }
 0x1b3   : > { %4820 = vmatmul.mubr.msk.bf16.vlgmr.msra.gmra.mrb[116].mxu0 %vm698_vm4, %v1889_v51 }
 0x1b4   : > { %4830 = vmatpush3.bf16.msra.mxu0 %v5638_v22  ;;  %4831 = vmatprep.mubr.msk.bf16.mxu0 %vm5312_vm0, %v5311_v1 }
 0x1b5   : > { %4841 = vmatprep.subr.bf16.mxu0 %v5311_v1 }
 0x1bb   : > { %4832 = vmatmul.mubr.msk.bf16.vlgmr.msra.gmra.mrb[120].mxu0 %vm698_vm4, %v2230_v54 }
 0x1bc   : > { %4842 = vmatpush3.bf16.msra.mxu0 %v5504_v13  ;;  %4843 = vmatprep.mubr.msk.bf16.mxu0 %vm5312_vm0, %v5311_v1 }
 0x1bd   : > { %4853 = vmatprep.subr.bf16.mxu0 %v5311_v1 }
 0x1c3   : > { %4844 = vmatmul.mubr.msk.bf16.vlgmr.msra.gmra.mrb[124].mxu0 %vm698_vm4, %v5683_v29 }
 0x1c4   : > { %4854 = vmatpush3.bf16.msra.mxu0 %v5539_v41  ;;  %4855 = vmatprep.mubr.msk.bf16.mxu0 %vm5312_vm0, %v5311_v1 }
 0x1c5   : > { %4865 = vmatprep.subr.bf16.mxu0 %v5311_v1 }
 0x1cb   : > { %4856 = vmatmul.mubr.msk.bf16.vlgmr.msra.gmra.mrb[128].mxu0 %vm698_vm4, %v1889_v51 }
 0x1cc   : > { %4866 = vmatpush3.bf16.msra.mxu0 %v5512_v15  ;;  %4867 = vmatprep.mubr.msk.bf16.mxu0 %vm5312_vm0, %v5311_v1 }
 0x1cd   : > { %4877 = vmatprep.subr.bf16.mxu0 %v5311_v1 }
 0x1d3   : > { %4868 = vmatmul.mubr.msk.bf16.vlgmr.msra.gmra.mrb[132].mxu0 %vm698_vm4, %v2230_v54 }
 0x1d4   : > { %4878 = vmatpush3.bf16.msra.mxu0 %v5570_v59  ;;  %4879 = vmatprep.mubr.msk.bf16.mxu0 %vm5312_vm0, %v5311_v1 }
 0x1d5   : > { %4889 = vmatprep.subr.bf16.mxu0 %v5311_v1 }
 0x1d6   : > { %v740_v13 = vpop.f32.mrb[28].mxu0 }
 0x1d7   : > { %v4629_v41 = vpop.f32.mrb[29].mxu0 }
 0x1d8   : > { %v743_v55 = vpop.f32.mrb[30].mxu0 }
 0x1d9   : > { %v4630_v56 = vpop.f32.mrb[31].mxu0 }
 0x1db   : > { %4880 = vmatmul.mubr.msk.bf16.vlgmr.msra.gmra.mrb[136].mxu0 %vm698_vm4, %v5781_v45 }
 0x1dc   : > { %4890 = vmatpush3.bf16.msra.mxu0 %v5600_v10  ;;  %4891 = vmatprep.mubr.msk.bf16.mxu0 %vm5312_vm0, %v5311_v1 }
 0x1dd   : > { %5045 = vmatprep.subr.bf16.mxu0 %v5311_v1 }
 0x1de   : > { %v785_v15 = vpop.f32.mrb[32].mxu0 }
 0x1df   : > { %v786_v57 = vadd.f32 %v785_v15, %v740_v13  ;;  %v4635_v58 = vpop.f32.mrb[33].mxu0 }
 0x1e0   : > { %v788_v59 = vpop.f32.mrb[34].mxu0 }
 0x1e1   : > { %v4636_v61 = vpop.f32.mrb[35].mxu0 }
 0x1e3   : > { %4892 = vmatmul.mubr.msk.bf16.vlgmr.msra.gmra.mrb[140].mxu0 %vm698_vm4, %v2663_v60 }
 0x1e4   : > { %5049 = vmatprep.mubr.msk.bf16.mxu0 %vm5312_vm0, %v5311_v1 }
 0x1e6   : > { %v835_v62 = vpop.f32.mrb[36].mxu0 }
 0x1e7   : > { %v841_v63 = vadd.f32 %v835_v62, %v786_v57  ;;  %v4641_v0 = vpop.f32.mrb[37].mxu0 }
 0x1e8   : > { %v838_v2 = vpop.f32.mrb[38].mxu0 }
 0x1e9   : > { %v4642_v3 = vpop.f32.mrb[39].mxu0 }
 0x1ee   : > { %v885_v4 = vpop.f32.mrb[40].mxu0  ;;  %v5875_v5 = vpop.f32.mrb[0].mxu1 }
 0x1ef   : > { %v891_v6 = vadd.f32 %v885_v4, %v841_v63  ;;  %v4647_v7 = vpop.f32.mrb[41].mxu0  ;;  %v4707_v8 = vpop.f32.mrb[1].mxu1 }
 0x1f0   : > { %v888_v9 = vpop.f32.mrb[42].mxu0  ;;  %v1361_v10 = vpop.f32.mrb[2].mxu1  ;;  %v5195_v7 = vld [vmem:[%s6178_s5 + $0x8] sm:$0xff]  }
 0x1f1   : > { %v4648_v11 = vpop.f32.mrb[43].mxu0  ;;  %v4708_v12 = vpop.f32.mrb[3].mxu1 }
 0x1f6   : > { %v940_v14 = vpop.f32.mrb[44].mxu0  ;;  %v5877_v17 = vpop.f32.mrb[4].mxu1 }
 0x1f7   : > { %v946_v18 = vadd.f32 %v940_v14, %v891_v6  ;;  %v4653_v19 = vpop.f32.mrb[45].mxu0  ;;  %v4719_v20 = vpop.f32.mrb[5].mxu1 }
 0x1f8   : > { %v943_v21 = vpop.f32.mrb[46].mxu0  ;;  %v1447_v22 = vpop.f32.mrb[6].mxu1 }
 0x1f9   : > { %v4654_v23 = vpop.f32.mrb[47].mxu0  ;;  %v4720_v24 = vpop.f32.mrb[7].mxu1 }
 0x1fe   : > { %v991_v25 = vpop.f32.mrb[48].mxu0  ;;  %v5879_v26 = vpop.f32.mrb[8].mxu1 }
 0x1ff   : > { %v997_v27 = vadd.f32 %v991_v25, %v946_v18  ;;  %v4659_v28 = vpop.f32.mrb[49].mxu0  ;;  %v4731_v29 = vpop.f32.mrb[9].mxu1 }
 0x200   : > { %v994_v30 = vpop.f32.mrb[50].mxu0  ;;  %v1543_v31 = vpop.f32.mrb[10].mxu1 }
 0x201   : > { %v4660_v32 = vpop.f32.mrb[51].mxu0  ;;  %v4732_v34 = vpop.f32.mrb[11].mxu1  ;;  %v5196_v31 = vld [vmem:[%s6178_s5 + $0x10] sm:$0xff]  }
 0x206   : > { %v1041_v35 = vpop.f32.mrb[52].mxu0  ;;  %v5881_v36 = vpop.f32.mrb[12].mxu1 }
 0x207   : > { %v1047_v37 = vadd.f32 %v1041_v35, %v997_v27  ;;  %v4665_v38 = vpop.f32.mrb[53].mxu0  ;;  %v4743_v39 = vpop.f32.mrb[13].mxu1 }
 0x208   : > { %v1044_v40 = vpop.f32.mrb[54].mxu0  ;;  %v1626_v42 = vpop.f32.mrb[14].mxu1 }
 0x209   : > { %v4666_v43 = vpop.f32.mrb[55].mxu0  ;;  %v4744_v44 = vpop.f32.mrb[15].mxu1 }
 0x20e   : > { %v1096_v16 = vpop.f32.mrb[56].mxu0  ;;  %v5883_v45 = vpop.f32.mrb[16].mxu1 }
 0x20f   : > { %v1102_v47 = vadd.f32 %v1096_v16, %v1047_v37  ;;  %v4671_v48 = vpop.f32.mrb[57].mxu0  ;;  %v4755_v49 = vpop.f32.mrb[17].mxu1 }
 0x210   : > { %v1099_v50 = vpop.f32.mrb[58].mxu0  ;;  %v1707_v51 = vpop.f32.mrb[18].mxu1  ;;  %v5197_v48 = vld [vmem:[%s6178_s5 + $0x18] sm:$0xff]  }
 0x211   : > { %v4672_v52 = vpop.f32.mrb[59].mxu0  ;;  %v4756_v33 = vpop.f32.mrb[19].mxu1 }
 0x216   : > { %v1147_v53 = vpop.f32.mrb[60].mxu0  ;;  %v5890_v54 = vpop.f32.mrb[20].mxu1 }
 0x217   : > { %v1153_v13 = vadd.f32 %v1147_v53, %v1102_v47  ;;  %v4677_v41 = vpop.f32.mrb[61].mxu0  ;;  %v4767_v55 = vpop.f32.mrb[21].mxu1 }
 0x218   : > { %v1150_v56 = vpop.f32.mrb[62].mxu0  ;;  %v1789_v15 = vpop.f32.mrb[22].mxu1 }
 0x219   : > { %v1160_v57 = vadd.f32 %v5888_v46, %v1153_v13  ;;  %v4678_v58 = vpop.f32.mrb[63].mxu0  ;;  %v4768_v59 = vpop.f32.mrb[23].mxu1 }
 0x21b   : > { %5235 = vtanh.f32 %v1160_v57 }
 0x21e   : > { %v1196_v60 = vpop.f32.mrb[64].mxu0  ;;  %v5893_v61 = vpop.f32.mrb[24].mxu1 }
 0x21f   : > { %v4683_v62 = vpop.f32.mrb[65].mxu0  ;;  %v4779_v63 = vpop.f32.mrb[25].mxu1 }
 0x220   : > { %v1199_v0 = vpop.f32.mrb[66].mxu0  ;;  %v1884_v2 = vpop.f32.mrb[26].mxu1 }
 0x221   : > { %v4684_v3 = vpop.f32.mrb[67].mxu0  ;;  %v4780_v4 = vpop.f32.mrb[27].mxu1 }
 0x225   : > { %v5236_v6 = vpop.eup %5235 }
 0x226   : > { %v5898_v8 = vpack.c.bf16 %v5236_v6, %v5236_v6  ;;  %v1236_v9 = vpop.f32.mrb[68].mxu0  ;;  %v5900_v10 = vpop.f32.mrb[28].mxu1 }
 0x227   : > { %v1237_v11 = vadd.f32 %v1236_v9, %v1196_v60  ;;  %v4689_v12 = vpop.f32.mrb[69].mxu0  ;;  %v4791_v14 = vpop.f32.mrb[29].mxu1 }
 0x228   : > { %v1239_v18 = vpop.f32.mrb[70].mxu0  ;;  %4898 = vmatmul.mubr.msk.bf16.vlgmr.msra.gmra.mrb[64].mxu1 %vm2720_vm5, %v5898_v8  ;;  %v1973_v19 = vpop.f32.mrb[30].mxu1  ;;  %v2768_v34 = vshrl.u32 %v5898_v8, 16  ;;  %v2824_v50 = vrot.slane %v5898_v8, 1 }
 0x229   : > { %4902 = vmatpush3.bf16.msra.mxu1 %v5195_v7  ;;  %v4690_v20 = vpop.f32.mrb[71].mxu0  ;;  %4903 = vmatprep.mubr.msk.bf16.mxu1 %vm5312_vm0, %v5311_v1  ;;  %v4792_v21 = vpop.f32.mrb[31].mxu1 }
 0x22a   : > { %4907 = vmatprep.subr.bf16.mxu1 %v5311_v1  ;;  %v2878_v4 = vrot.slane %v2768_v34, 1  ;;  %v5199_v21 = vld [vmem:[%s6178_s5 + $0x28] sm:$0xff]  }
 0x22e   : > { %v1276_v22 = vpop.f32.mrb[72].mxu0  ;;  %v5907_v23 = vpop.f32.mrb[32].mxu1 }
 0x22f   : > { %v1282_v24 = vadd.f32 %v1276_v22, %v1237_v11  ;;  %v4695_v25 = vpop.f32.mrb[73].mxu0  ;;  %v4803_v27 = vpop.f32.mrb[33].mxu1 }
 0x230   : > { %v1279_v28 = vpop.f32.mrb[74].mxu0  ;;  %v2053_v29 = vpop.f32.mrb[34].mxu1 }
 0x231   : > { %v4696_v30 = vpop.f32.mrb[75].mxu0  ;;  %v4804_v32 = vpop.f32.mrb[35].mxu1 }
 0x234   : > { %4904 = vmatmul.mubr.msk.bf16.vlgmr.msra.gmra.mrb[64].mxu1 %vm2720_vm5, %v2768_v34 }
 0x235   : > { %4908 = vmatpush3.bf16.msra.mxu1 %v5196_v31  ;;  %4909 = vmatprep.mubr.msk.bf16.mxu1 %vm5312_vm0, %v5311_v1 }
 0x236   : > { %v1317_v35 = vpop.f32.mrb[76].mxu0  ;;  %4913 = vmatprep.subr.bf16.mxu1 %v5311_v1  ;;  %v5917_v37 = vpop.f32.mrb[36].mxu1 }
 0x237   : > { %v1323_v38 = vadd.f32 %v1317_v35, %v1282_v24  ;;  %v4701_v39 = vpop.f32.mrb[77].mxu0  ;;  %v4815_v40 = vpop.f32.mrb[37].mxu1  ;;  %v2932_v24 = vrot.slane %v5898_v8, 2 }
 0x238   : > { %v1320_v42 = vpop.f32.mrb[78].mxu0  ;;  %v2135_v43 = vpop.f32.mrb[38].mxu1 }
 0x239   : > { %v4702_v44 = vpop.f32.mrb[79].mxu0  ;;  %v1364_v16 = vadd.f32 %v5875_v5, %v1323_v38  ;;  %v4816_v47 = vpop.f32.mrb[39].mxu1 }
 0x23e   : > { %v1399_v49 = vpop.f32.mrb[80].mxu0  ;;  %v5924_v51 = vpop.f32.mrb[40].mxu1 }
 0x23f   : > { %v1405_v52 = vadd.f32 %v1399_v49, %v1364_v16  ;;  %v4713_v33 = vpop.f32.mrb[81].mxu0  ;;  %v4827_v53 = vpop.f32.mrb[41].mxu1 }
 0x240   : > { %v1402_v13 = vpop.f32.mrb[82].mxu0  ;;  %4910 = vmatmul.mubr.msk.bf16.vlgmr.msra.gmra.mrb[64].mxu1 %vm2720_vm5, %v2824_v50  ;;  %v2221_v41 = vpop.f32.mrb[42].mxu1 }
 0x241   : > { %4914 = vmatpush3.bf16.msra.mxu1 %v5197_v48  ;;  %v4714_v55 = vpop.f32.mrb[83].mxu0  ;;  %v1450_v5 = vadd.f32 %v5877_v17, %v1405_v52  ;;  %4915 = vmatprep.mubr.msk.bf16.mxu1 %vm5312_vm0, %v5311_v1  ;;  %v4828_v56 = vpop.f32.mrb[43].mxu1  ;;  %v5198_v17 = vld [vmem:[%s6178_s5 + $0x20] sm:$0xff]  }
 0x242   : > { %4919 = vmatprep.subr.bf16.mxu1 %v5311_v1 }
 0x246   : > { %v1494_v15 = vpop.f32.mrb[84].mxu0  ;;  %v5931_v57 = vpop.f32.mrb[44].mxu1 }
 0x247   : > { %v1500_v58 = vadd.f32 %v1494_v15, %v1450_v5  ;;  %v4725_v59 = vpop.f32.mrb[85].mxu0  ;;  %v4839_v60 = vpop.f32.mrb[45].mxu1  ;;  %v5201_v15 = vld [vmem:[%s6178_s5 + $0x38] sm:$0xff]  }
 0x248   : > { %v1497_v62 = vpop.f32.mrb[86].mxu0  ;;  %v2317_v63 = vpop.f32.mrb[46].mxu1 }
 0x249   : > { %v1546_v0 = vadd.f32 %v5879_v26, %v1500_v58  ;;  %v4726_v2 = vpop.f32.mrb[87].mxu0  ;;  %v4840_v3 = vpop.f32.mrb[47].mxu1 }
 0x24b   : > { %v1547_v18 = vadd.f32 %v5888_v46, %v1546_v0 }
 0x24c   : > { %4916 = vmatmul.mubr.msk.bf16.vlgmr.msra.gmra.mrb[64].mxu1 %vm2720_vm5, %v2878_v4 }
 0x24d   : > { %4920 = vmatpush3.bf16.msra.mxu1 %v5198_v17  ;;  %4921 = vmatprep.mubr.msk.bf16.mxu1 %vm5312_vm0, %v5311_v1  ;;  %5237 = vtanh.f32 %v1547_v18 }
 0x24e   : > { %v1583_v6 = vpop.f32.mrb[88].mxu0  ;;  %4925 = vmatprep.subr.bf16.mxu1 %v5311_v1  ;;  %v5941_v7 = vpop.f32.mrb[48].mxu1 }
 0x24f   : > { %v1624_v26 = vadd.f32 %v5881_v36, %v1583_v6  ;;  %v4737_v9 = vpop.f32.mrb[89].mxu0  ;;  %v4851_v11 = vpop.f32.mrb[49].mxu1  ;;  %v5202_v6 = vld [vmem:[%s6178_s5 + $0x40] sm:$0xff]  }
 0x250   : > { %v1586_v12 = vpop.f32.mrb[90].mxu0  ;;  %v2400_v14 = vpop.f32.mrb[50].mxu1 }
 0x251   : > { %v4738_v19 = vpop.f32.mrb[91].mxu0  ;;  %v4852_v20 = vpop.f32.mrb[51].mxu1 }
 0x256   : > { %v1663_v22 = vpop.f32.mrb[92].mxu0  ;;  %v5949_v25 = vpop.f32.mrb[52].mxu1 }
 0x257   : > { %v1669_v27 = vadd.f32 %v1663_v22, %v1624_v26  ;;  %v4749_v36 = vpop.f32.mrb[93].mxu0  ;;  %v4863_v28 = vpop.f32.mrb[53].mxu1 }
 0x258   : > { %v1666_v29 = vpop.f32.mrb[94].mxu0  ;;  %4922 = vmatmul.mubr.msk.bf16.vlgmr.msra.gmra.mrb[64].mxu1 %vm2720_vm5, %v2932_v24  ;;  %v2481_v30 = vpop.f32.mrb[54].mxu1 }
 0x259   : > { %4926 = vmatpush3.bf16.msra.mxu1 %v5199_v21  ;;  %v4750_v31 = vpop.f32.mrb[95].mxu0  ;;  %v1710_v32 = vadd.f32 %v5883_v45, %v1669_v27  ;;  %4927 = vmatprep.mubr.msk.bf16.mxu1 %vm5312_vm0, %v5311_v1  ;;  %v4864_v34 = vpop.f32.mrb[55].mxu1  ;;  %v5200_v45 = vld [vmem:[%s6178_s5 + $0x30] sm:$0xff]  }
 0x25a   : > { %4931 = vmatprep.subr.bf16.mxu1 %v5311_v1  ;;  %v5238_v38 = vpop.eup %5237 }
 0x25b   : > { %v5962_v49 = vpack.c.bf16 %v5238_v38, %v5238_v38 }
 0x25d   : > { %v3040_v59 = vshrl.u32 %v5962_v49, 16  ;;  %v3096_v9 = vrot.slane %v5962_v49, 1 }
 0x25e   : > { %v1745_v8 = vpop.f32.mrb[96].mxu0  ;;  %v5956_v35 = vpop.f32.mrb[56].mxu1 }
 0x25f   : > { %v1751_v39 = vadd.f32 %v1745_v8, %v1710_v32  ;;  %v4761_v40 = vpop.f32.mrb[97].mxu0  ;;  %v4875_v42 = vpop.f32.mrb[57].mxu1  ;;  %v3150_v21 = vrot.slane %v3040_v59, 1  ;;  %v5204_v8 = vld [vmem:[%s6178_s5 + $0x50] sm:$0xff]  }
 0x260   : > { %v1748_v43 = vpop.f32.mrb[98].mxu0  ;;  %v2563_v44 = vpop.f32.mrb[58].mxu1 }
 0x261   : > { %v4762_v16 = vpop.f32.mrb[99].mxu0  ;;  %v1792_v47 = vadd.f32 %v5890_v54, %v1751_v39  ;;  %v4876_v48 = vpop.f32.mrb[59].mxu1 }
 0x262   : > { %v5205_v16 = vld [vmem:[%s6178_s5 + $0x58] sm:$0xff]  }
 0x264   : > { %4928 = vmatmul.mubr.msk.bf16.vlgmr.msra.gmra.mrb[64].mxu1 %vm2720_vm5, %v5962_v49 }
 0x265   : > { %4932 = vmatpush3.bf16.msra.mxu1 %v5200_v45  ;;  %4933 = vmatprep.mubr.msk.bf16.mxu1 %vm5312_vm0, %v5311_v1 }
 0x266   : > { %v1831_v50 = vpop.f32.mrb[100].mxu0  ;;  %4937 = vmatprep.subr.bf16.mxu1 %v5311_v1  ;;  %v5969_v52 = vpop.f32.mrb[60].mxu1 }
 0x267   : > { %v1837_v33 = vadd.f32 %v1831_v50, %v1792_v47  ;;  %v4773_v53 = vpop.f32.mrb[101].mxu0  ;;  %v4887_v13 = vpop.f32.mrb[61].mxu1 }
 0x268   : > { %v1834_v41 = vpop.f32.mrb[102].mxu0  ;;  %v2658_v54 = vpop.f32.mrb[62].mxu1 }
 0x269   : > { %v4774_v55 = vpop.f32.mrb[103].mxu0  ;;  %v1887_v5 = vadd.f32 %v5893_v61, %v1837_v33  ;;  %v4888_v56 = vpop.f32.mrb[63].mxu1 }
 0x26e   : > { %v1927_v58 = vpop.f32.mrb[104].mxu0 }
 0x26f   : > { %v1933_v60 = vadd.f32 %v1927_v58, %v1887_v5  ;;  %v4785_v62 = vpop.f32.mrb[105].mxu0  ;;  %v5206_v5 = vld [vmem:[%s6178_s5 + $0x60] sm:$0xff]  }
 0x270   : > { %4934 = vmatmul.mubr.msk.bf16.vlgmr.msra.gmra.mrb[64].mxu1 %vm2720_vm5, %v3040_v59  ;;  %v1930_v63 = vpop.f32.mrb[106].mxu0 }
 0x271   : > { %4938 = vmatpush3.bf16.msra.mxu1 %v5201_v15  ;;  %v4786_v0 = vpop.f32.mrb[107].mxu0  ;;  %4939 = vmatprep.mubr.msk.bf16.mxu1 %vm5312_vm0, %v5311_v1 }
 0x272   : > { %4943 = vmatprep.subr.bf16.mxu1 %v5311_v1 }
 0x276   : > { %v2010_v61 = vpop.f32.mrb[108].mxu0 }
 0x277   : > { %v2011_v17 = vadd.f32 %v2010_v61, %v5900_v10  ;;  %v4797_v2 = vpop.f32.mrb[109].mxu0 }
 0x278   : > { %v2013_v3 = vpop.f32.mrb[110].mxu0 }
 0x279   : > { %v4798_v4 = vpop.f32.mrb[111].mxu0  ;;  %v2056_v26 = vadd.f32 %v5907_v23, %v2011_v17  ;;  %v5203_v23 = vld [vmem:[%s6178_s5 + $0x48] sm:$0xff]  }
 0x27c   : > { %4940 = vmatmul.mubr.msk.bf16.vlgmr.msra.gmra.mrb[64].mxu1 %vm2720_vm5, %v3096_v9  ;;  %v5209_v9 = vld [vmem:[%s6178_s5 + $0x78] sm:$0xff]  }
 0x27d   : > { %4944 = vmatpush3.bf16.msra.mxu1 %v5202_v6  ;;  %4945 = vmatprep.mubr.msk.bf16.mxu1 %vm5312_vm0, %v5311_v1 }
 0x27e   : > { %v2091_v11 = vpop.f32.mrb[112].mxu0  ;;  %4949 = vmatprep.subr.bf16.mxu1 %v5311_v1 }
 0x27f   : > { %v2097_v10 = vadd.f32 %v2091_v11, %v2056_v26  ;;  %v4809_v12 = vpop.f32.mrb[113].mxu0 }
 0x280   : > { %v2094_v14 = vpop.f32.mrb[114].mxu0  ;;  %v5210_v12 = vld [vmem:[%s6178_s5 + $0x80] sm:$0xff]  }
 0x281   : > { %v4810_v18 = vpop.f32.mrb[115].mxu0  ;;  %v2138_v19 = vadd.f32 %v5917_v37, %v2097_v10  ;;  %v1934_v37 = vadd.f32 %v5888_v46, %v1933_v60 }
 0x282   : > { %v5211_v18 = vld [vmem:[%s6178_s5 + $0x88] sm:$0xff]  }
 0x283   : > { %5239 = vtanh.f32 %v1934_v37  ;;  %v5215_v37 = vld [vmem:[%s6178_s5 + $0xa8] sm:$0xff]  }
 0x286   : > { %v2173_v20 = vpop.f32.mrb[116].mxu0 }
 0x287   : > { %v2179_v22 = vadd.f32 %v2173_v20, %v2138_v19  ;;  %v4821_v24 = vpop.f32.mrb[117].mxu0 }
 0x288   : > { %v2176_v27 = vpop.f32.mrb[118].mxu0  ;;  %4946 = vmatmul.mubr.msk.bf16.vlgmr.msra.gmra.mrb[64].mxu1 %vm2720_vm5, %v3150_v21  ;;  %v5213_v21 = vld [vmem:[%s6178_s5 + $0x98] sm:$0xff]  }
 0x289   : > { %4950 = vmatpush3.bf16.msra.mxu1 %v5203_v23  ;;  %v4822_v36 = vpop.f32.mrb[119].mxu0  ;;  %v2224_v28 = vadd.f32 %v5924_v51, %v2179_v22  ;;  %4951 = vmatprep.mubr.msk.bf16.mxu1 %vm5312_vm0, %v5311_v1  ;;  %v3204_v51 = vrot.slane %v5962_v49, 2  ;;  %v5212_v23 = vld [vmem:[%s6178_s5 + $0x90] sm:$0xff]   ;;  %v5214_v27 = vld [vmem:[%s6178_s5 + $0xa0] sm:$0xff]  }
 0x28a   : > { %4955 = vmatprep.subr.bf16.mxu1 %v5311_v1 }
 0x28d   : > { %v5240_v44 = vpop.eup %5239 }
 0x28e   : > { %v2268_v29 = vpop.f32.mrb[120].mxu0  ;;  %v3255_v45 = vpack.c.bf16 %v5240_v44, %v5240_v44 }
 0x28f   : > { %v2274_v30 = vadd.f32 %v2268_v29, %v2224_v28  ;;  %v4833_v31 = vpop.f32.mrb[121].mxu0  ;;  %v5216_v29 = vld [vmem:[%s6178_s5 + $0xb0] sm:$0xff]  }
 0x290   : > { %v2271_v32 = vpop.f32.mrb[122].mxu0  ;;  %v3312_v15 = vshrl.u32 %v3255_v45, 16  ;;  %v3368_v61 = vrot.slane %v3255_v45, 1  ;;  %v3476_v11 = vrot.slane %v3255_v45, 2  ;;  %v5217_v31 = vld [vmem:[%s6178_s5 + $0xb8] sm:$0xff]  }
 0x291   : > { %v2320_v34 = vadd.f32 %v5931_v57, %v2274_v30  ;;  %v4834_v38 = vpop.f32.mrb[123].mxu0 }
 0x292   : > { %v3422_v6 = vrot.slane %v3312_v15, 1 }
 0x293   : > { %v2321_v26 = vadd.f32 %v5888_v46, %v2320_v34  ;;  %v5218_v34 = vld [vmem:[%s6178_s5 + $0xc0] sm:$0xff]  }
 0x294   : > { %4952 = vmatmul.mubr.msk.bf16.vlgmr.msra.gmra.mrb[64].mxu1 %vm2720_vm5, %v3204_v51  ;;  %v5219_v51 = vld [vmem:[%s6179_s6] sm:$0xff]  }
 0x295   : > { %4956 = vmatpush3.bf16.msra.mxu1 %v5204_v8  ;;  %4957 = vmatprep.mubr.msk.bf16.mxu1 %vm5312_vm0, %v5311_v1  ;;  %5241 = vtanh.f32 %v2321_v26 }
 0x296   : > { %v2357_v39 = vpop.f32.mrb[124].mxu0  ;;  %4961 = vmatprep.subr.bf16.mxu1 %v5311_v1  ;;  %5046 = vmatpush3.bf16.msra.mxu0 %v5219_v51 }
 0x297   : > { %v2398_v40 = vadd.f32 %v5941_v7, %v2357_v39  ;;  %v4845_v42 = vpop.f32.mrb[125].mxu0  ;;  %5047 = vmatprep.subr.bf16.mxu0 %v5311_v1  ;;  %v5220_v39 = vld [vmem:[%s6179_s6 + $0x8] sm:$0xff]  }
 0x298   : > { %v2360_v57 = vpop.f32.mrb[126].mxu0 }
 0x299   : > { %v4846_v43 = vpop.f32.mrb[127].mxu0 }
 0x29a   : > { %5048 = vmatpush3.bf16.msra.mxu0 %v5220_v39 }
 0x29e   : > { %v2437_v47 = vpop.f32.mrb[128].mxu0 }
 0x29f   : > { %v2443_v48 = vadd.f32 %v2437_v47, %v2398_v40  ;;  %v4857_v49 = vpop.f32.mrb[129].mxu0  ;;  %v5242_v10 = vpop.eup %5241  ;;  %v2710_v40 = vld [vmem:[%s6180_s7] sm:$0x1] }
 0x2a0   : > { %v2440_v50 = vpop.f32.mrb[130].mxu0  ;;  %4958 = vmatmul.mubr.msk.bf16.vlgmr.msra.gmra.mrb[64].mxu1 %vm2720_vm5, %v3255_v45  ;;  %v3527_v14 = vpack.c.bf16 %v5242_v10, %v5242_v10 }
 0x2a1   : > { %v2484_v33 = vadd.f32 %v5949_v25, %v2443_v48  ;;  %4962 = vmatpush3.bf16.msra.mxu1 %v5205_v16  ;;  %v4858_v53 = vpop.f32.mrb[131].mxu0  ;;  %4963 = vmatprep.mubr.msk.bf16.mxu1 %vm5312_vm0, %v5311_v1 }
 0x2a2   : > { %4967 = vmatprep.subr.bf16.mxu1 %v5311_v1  ;;  %v3584_v19 = vshrl.u32 %v3527_v14, 16  ;;  %v3640_v20 = vrot.slane %v3527_v14, 1  ;;  %v3748_v36 = vrot.slane %v3527_v14, 2 }
 0x2a4   : > { %v3694_v22 = vrot.slane %v3584_v19, 1 }
 0x2a6   : > { %v2519_v7 = vpop.f32.mrb[132].mxu0 }
 0x2a7   : > { %v2525_v13 = vadd.f32 %v2519_v7, %v2484_v33  ;;  %v4869_v41 = vpop.f32.mrb[133].mxu0 }
 0x2a8   : > { %v2522_v54 = vpop.f32.mrb[134].mxu0 }
 0x2a9   : > { %v4870_v55 = vpop.f32.mrb[135].mxu0  ;;  %v2566_v56 = vadd.f32 %v5956_v35, %v2525_v13  ;;  %v5207_v35 = vld [vmem:[%s6178_s5 + $0x68] sm:$0xff]  }
 0x2ac   : > { %4964 = vmatmul.mubr.msk.bf16.vlgmr.msra.gmra.mrb[64].mxu1 %vm2720_vm5, %v3312_v15 }
 0x2ad   : > { %4968 = vmatpush3.bf16.msra.mxu1 %v5206_v5  ;;  %4969 = vmatprep.mubr.msk.bf16.mxu1 %vm5312_vm0, %v5311_v1 }
 0x2ae   : > { %v2605_v25 = vpop.f32.mrb[136].mxu0  ;;  %4973 = vmatprep.subr.bf16.mxu1 %v5311_v1 }
 0x2af   : > { %v2611_v58 = vadd.f32 %v2605_v25, %v2566_v56  ;;  %v4881_v59 = vpop.f32.mrb[137].mxu0 }
 0x2b0   : > { %v2608_v60 = vpop.f32.mrb[138].mxu0 }
 0x2b1   : > { %v2661_v62 = vadd.f32 %v5969_v52, %v2611_v58  ;;  %v4882_v63 = vpop.f32.mrb[139].mxu0  ;;  %v5208_v52 = vld [vmem:[%s6178_s5 + $0x70] sm:$0xff]  }
 0x2b6   : > { %v2701_v0 = vpop.f32.mrb[140].mxu0 }
 0x2b7   : > { %v2707_v17 = vadd.f32 %v2701_v0, %v2661_v62  ;;  %v4893_v2 = vpop.f32.mrb[141].mxu0 }
 0x2b8   : > { %v2704_v3 = vpop.f32.mrb[142].mxu0  ;;  %4970 = vmatmul.mubr.msk.bf16.vlgmr.msra.gmra.mrb[64].mxu1 %vm2720_vm5, %v3368_v61 }
 0x2b9   : > { %4974 = vmatpush3.bf16.msra.mxu1 %v5207_v35  ;;  %v4894_v4 = vpop.f32.mrb[143].mxu0  ;;  %4975 = vmatprep.mubr.msk.bf16.mxu1 %vm5312_vm0, %v5311_v1  ;;  %v2708_v24 = vadd.f32 %v5888_v46, %v2707_v17 }
 0x2ba   : > { %4979 = vmatprep.subr.bf16.mxu1 %v5311_v1 }
 0x2bb   : > { %5243 = vtanh.f32 %v2708_v24 }
 0x2c4   : > { %4976 = vmatmul.mubr.msk.bf16.vlgmr.msra.gmra.mrb[64].mxu1 %vm2720_vm5, %v3422_v6 }
 0x2c5   : > { %4980 = vmatpush3.bf16.msra.mxu1 %v5208_v52  ;;  %4981 = vmatprep.mubr.msk.bf16.mxu1 %vm5312_vm0, %v5311_v1  ;;  %v5244_v28 = vpop.eup %5243 }
 0x2c6   : > { %4985 = vmatprep.subr.bf16.mxu1 %v5311_v1  ;;  %v3799_v46 = vpack.c.bf16 %v5244_v28, %v5244_v28 }
 0x2c8   : > { %v3856_v30 = vshrl.u32 %v3799_v46, 16  ;;  %v3912_v32 = vrot.slane %v3799_v46, 1  ;;  %v4020_v38 = vrot.slane %v3799_v46, 2 }
 0x2ca   : > { %v3966_v8 = vrot.slane %v3856_v30, 1 }
 0x2d0   : > { %4982 = vmatmul.mubr.msk.bf16.vlgmr.msra.gmra.mrb[64].mxu1 %vm2720_vm5, %v3476_v11 }
 0x2d1   : > { %4986 = vmatpush3.bf16.msra.mxu1 %v5209_v9  ;;  %4987 = vmatprep.mubr.msk.bf16.mxu1 %vm5312_vm0, %v5311_v1 }
 0x2d2   : > { %4991 = vmatprep.subr.bf16.mxu1 %v5311_v1 }
 0x2dc   : > { %4988 = vmatmul.mubr.msk.bf16.vlgmr.msra.gmra.mrb[64].mxu1 %vm2720_vm5, %v3527_v14 }
 0x2dd   : > { %4992 = vmatpush3.bf16.msra.mxu1 %v5210_v12  ;;  %4993 = vmatprep.mubr.msk.bf16.mxu1 %vm5312_vm0, %v5311_v1 }
 0x2de   : > { %4997 = vmatprep.subr.bf16.mxu1 %v5311_v1 }
 0x2e8   : > { %4994 = vmatmul.mubr.msk.bf16.vlgmr.msra.gmra.mrb[64].mxu1 %vm2720_vm5, %v3584_v19 }
 0x2e9   : > { %4998 = vmatpush3.bf16.msra.mxu1 %v5211_v18  ;;  %4999 = vmatprep.mubr.msk.bf16.mxu1 %vm5312_vm0, %v5311_v1 }
 0x2ea   : > { %5003 = vmatprep.subr.bf16.mxu1 %v5311_v1 }
 0x2f4   : > { %5000 = vmatmul.mubr.msk.bf16.vlgmr.msra.gmra.mrb[64].mxu1 %vm2720_vm5, %v3640_v20 }
 0x2f5   : > { %5004 = vmatpush3.bf16.msra.mxu1 %v5212_v23  ;;  %5005 = vmatprep.mubr.msk.bf16.mxu1 %vm5312_vm0, %v5311_v1 }
 0x2f6   : > { %5009 = vmatprep.subr.bf16.mxu1 %v5311_v1 }
 0x300   : > { %5006 = vmatmul.mubr.msk.bf16.vlgmr.msra.gmra.mrb[64].mxu1 %vm2720_vm5, %v3694_v22 }
 0x301   : > { %5010 = vmatpush3.bf16.msra.mxu1 %v5213_v21  ;;  %5011 = vmatprep.mubr.msk.bf16.mxu1 %vm5312_vm0, %v5311_v1 }
 0x302   : > { %5015 = vmatprep.subr.bf16.mxu1 %v5311_v1 }
 0x30c   : > { %5012 = vmatmul.mubr.msk.bf16.vlgmr.msra.gmra.mrb[64].mxu1 %vm2720_vm5, %v3748_v36 }
 0x30d   : > { %5016 = vmatpush3.bf16.msra.mxu1 %v5214_v27  ;;  %5017 = vmatprep.mubr.msk.bf16.mxu1 %vm5312_vm0, %v5311_v1 }
 0x30e   : > { %5021 = vmatprep.subr.bf16.mxu1 %v5311_v1 }
 0x318   : > { %5018 = vmatmul.mubr.msk.bf16.vlgmr.msra.gmra.mrb[64].mxu1 %vm2720_vm5, %v3799_v46 }
 0x319   : > { %5022 = vmatpush3.bf16.msra.mxu1 %v5215_v37  ;;  %5023 = vmatprep.mubr.msk.bf16.mxu1 %vm5312_vm0, %v5311_v1 }
 0x31a   : > { %5027 = vmatprep.subr.bf16.mxu1 %v5311_v1 }
 0x324   : > { %5024 = vmatmul.mubr.msk.bf16.vlgmr.msra.gmra.mrb[64].mxu1 %vm2720_vm5, %v3856_v30 }
 0x325   : > { %5028 = vmatpush3.bf16.msra.mxu1 %v5216_v29  ;;  %5029 = vmatprep.mubr.msk.bf16.mxu1 %vm5312_vm0, %v5311_v1 }
 0x326   : > { %5033 = vmatprep.subr.bf16.mxu1 %v5311_v1 }
 0x330   : > { %5030 = vmatmul.mubr.msk.bf16.vlgmr.msra.gmra.mrb[64].mxu1 %vm2720_vm5, %v3912_v32 }
 0x331   : > { %5034 = vmatpush3.bf16.msra.mxu1 %v5217_v31  ;;  %5035 = vmatprep.mubr.msk.bf16.mxu1 %vm5312_vm0, %v5311_v1 }
 0x332   : > { %5039 = vmatprep.subr.bf16.mxu1 %v5311_v1 }
 0x33c   : > { %5036 = vmatmul.mubr.msk.bf16.vlgmr.msra.gmra.mrb[64].mxu1 %vm2720_vm5, %v3966_v8 }
 0x33d   : > { %5040 = vmatpush3.bf16.msra.mxu1 %v5218_v34  ;;  %5041 = vmatprep.mubr.msk.bf16.mxu1 %vm5312_vm0, %v5311_v1  ;;  %v4077_v1 = vld [vmem:[%s6181_s8] sm:$0x1] }
 0x348   : > { %5042 = vmatmul.mubr.msk.bf16.vlgmr.msra.gmra.mrb[64].mxu1 %vm2720_vm5, %v4020_v38 }
 0x41b   : > { %v4064_v42 = vpop.f32.mrb[64].mxu1 }
 0x41c   : > { %v5053_v57 = vadd.f32 %v4064_v42, %v2710_v40  ;;  %v5043_v43 = vpop.f32.mrb[65].mxu1 }
 0x41d   : > { %v4067_v44 = vpop.f32.mrb[66].mxu1 }
 0x41e   : > { %5245 = vtanh.f32 %v5053_v57  ;;  %v5044_v16 = vpop.f32.mrb[67].mxu1 }
 0x428   : > { %v5246_v45 = vpop.eup %5245 }
 0x429   : > { %v4072_v47 = vpack.c.bf16 %v5246_v45, %v5246_v45 }
 0x42b   : > { %5050 = vmatmul.mubr.msk.bf16.vlgmr.msra.gmra.mrb[144].mxu0 %vm4090_vm6, %v4072_v47 }
 0x4fe   : > { %v4128_v48 = vpop.f32.mrb[144].mxu0 }
 0x4ff   : > { %v4129_v49 = vadd.f32 %v4128_v48, %v4077_v1  ;;  %v5051_v50 = vpop.f32.mrb[145].mxu0 }
 0x500   : > { %v4131_v33 = vpop.f32.mrb[146].mxu0 }
 0x501   : > { %v5052_v53 = vpop.f32.mrb[147].mxu0  ;;  %4135 = vst.msk [vmem:[%s325_s14] sm:$0x1] %vm4134_vm7, %v4129_v49 }
 0x502   : > { %5260 = shalt.err (!%p5257_p3)
}
 0x503   : > { %s5261_s26 = scalar_lea.hbm %s6131_s22, 16  ;;  %s5265_s14 = scalar_lea.hbm %s6182_s9, 32 }
 0x504   : > { %p5262_p4 = scmp.ne.s32.totalorder %s6131_s22, %s5261_s26  ;;  %p5266_p9 = scmp.lt.u32.totalorder %s6131_s22, %s6182_s9 }
 0x505   : > { %p5267_p10 = scmp.lt.u32.totalorder %s5265_s14, %s5261_s26  ;;  %p5269_p12 = scmp.lt.u32.totalorder %s5261_s26, %s6131_s22 }
 0x506   : > { %p5263_p7 = pnand %p5262_p4, %p5402_p5 }
 0x507   : > { %p5268_p11 = por %p5267_p10, %p5266_p9 }
 0x508   : > { %p5264_p8 = pneg %p5263_p7 }
 0x509   : > { %p5270_p13 = por %p5269_p12, %p5268_p11 }
 0x50b   : > { %p5271_p0 = pnand %p5270_p13, %p5264_p8 }
 0x50d   : > { %5274 = shalt.err (!%p5271_p0)
}
 0x50e   : > { %5150 = dma.vmem_to_hbm [thread:$0]  (%p5402_p5), %s6133_s16, 16, %s6131_s22, %s4137_s13  }
 0x50f PF: > { %p5156_p1 = scmp.ge.s32.totalorder %s5309_s12, 2  ;;  %s4161_s23 = sand.u32 1, %s5297_s30  }
 0x510   : > { %s4162_s24 = scalar_lea.sflag [#allocation3], %s4161_s23 }
 0x511   : > { %p5153_p2 = pnand %p5156_p1, %p5406_p6 }
 0x513   : > { %5292 = dma.done.wait (!%p5153_p2), %s4162_s24, 16  }
 0x514   : > { %5294 = vsyncadd (!%p5153_p2), %s4162_s24, 4294967280  ;;  %p19_p3 = scmp.ge.s32.totalorder %s5389_s15, 4   ;;  %s6185_s30 = smov %s5301_s10 }
 0x515   : > { %s6186_s10 = smov %s5305_s11  ;;  %s6187_s11 = smov %s5400_s18 }
 0x516   : > { %s6188_s12 = smov %s5389_s15  ;;  %21 = sbr.rel (!%p19_p3) target bundleno = 3 (0x3), region = 129 }
 0x51d   :  { %4166 = vsyncpa [#allocation3], 1 }
 0x51e   :  { %4168 = vsyncpa [#allocation3 + $0x1], 1 }

</bundles_post_ra>
